<compile_context>
chip_gen: v7x
topology: tpu7x:2x2x1
jax: 0.10.0
libtpu: 0.0.40
codegen_flags: <defaults>
</compile_context>

<pallas_src>
import jax
import jax.numpy as jnp
import numpy as np
from jax.experimental import pallas as pl
from jax.experimental.pallas import tpu as pltpu

REG_MAX = 16
C_IN = 4 * (REG_MAX + 1)       # 68
BOX_PER_ROW = 32               # boxes packed per lane-dense row: 32 * 68 = 2176 lanes
LANES_OUT = BOX_PER_ROW * 4    # 128 output lanes (32 boxes * 4 coords)
ROW_GRAN = 16                  # sublane-row granularity for blocks (bf16 (16,128)-safe)


def _round_up(x, m):
    return ((x + m - 1) // m) * m


def _make_projection_matrix(reg_max):
    """Block-diagonal reduction matrix W of shape (32*4*(reg_max+1), 256), bf16.

    For input column r (box g, coord e, bin j):
      W[r, g*4 + e]        = 1.0   -> per-group sum of exp   (softmax denominator)
      W[r, 128 + g*4 + e]  = j     -> per-group sum of exp*j (projected numerator)
    All entries (0..reg_max and 1.0) are exactly representable in bf16.
    """
    nbins = reg_max + 1
    c_in = 4 * nbins
    rows = BOX_PER_ROW * c_in
    r = np.arange(rows)
    g = r // c_in
    e = (r % c_in) // nbins
    j = (r % nbins).astype(np.float32)
    out_col = g * 4 + e
    w = np.zeros((rows, 2 * LANES_OUT), dtype=np.float32)
    w[r, out_col] = 1.0
    w[r, LANES_OUT + out_col] = j
    return jnp.asarray(w, dtype=jnp.bfloat16)


def _integral_kernel(x_ref, w_ref, o_ref):
    """x_ref: (TG, 32*4*nbins)   w_ref: (32*4*nbins, 256) bf16   ->  o_ref: (TG, 128)."""
    x = x_ref[...].astype(jnp.float32)

    # Row-wide max is an exact stabilizer for every per-group softmax in this row.
    # The clamp only activates for degenerate rows (spread > 75) and prevents 0/0.
    m = jnp.max(x, axis=-1, keepdims=True)
    e = jnp.exp(jnp.maximum(x - m, -75.0))

    # Single bf16 MXU pass (f32 accumulation): per box/coord, cols [0,128) hold the
    # softmax denominator and cols [128,256) the projected numerator.
    red = jnp.dot(e.astype(jnp.bfloat16), w_ref[...],
                  preferred_element_type=jnp.float32)
    denom = red[:, :LANES_OUT]
    numer = red[:, LANES_OUT:]

    # EUP approximate reciprocal keeps the divide off the VALU slot.
    o_ref[...] = (numer * pl.reciprocal(denom, approx=True)).astype(o_ref.dtype)


def integral(x, reg_max=REG_MAX, tile_boxes=8192):
    """JAX/Pallas equivalent of Integral.forward.

    x: (B, N_boxes, 4*(reg_max+1))  ->  (B, N_boxes, 4)
    """
    b, nb, c = x.shape
    nbins = reg_max + 1
    assert c == 4 * nbins, f"expected last dim {4 * nbins}, got {c}"

    n = b * nb
    lanes_in = BOX_PER_ROW * c

    # Lane-dense view: 32 boxes per row.  Pad only to 32-box granularity (or 512-box
    # granularity for tiny inputs so every block stays (16,128)-aligned); ragged tile
    # tails are handled by the pl.cdiv grid, never by padding to a tile multiple.
    rows_raw = pl.cdiv(n, BOX_PER_ROW)
    if rows_raw <= 4 * ROW_GRAN:
        rows = _round_up(rows_raw, ROW_GRAN)     # tiny input: cheap, keeps blocks aligned
    else:
        rows = rows_raw
    n_pad = rows * BOX_PER_ROW

    x2d = x.reshape(n, c)
    if n_pad != n:
        # TODO(synk): for huge N with N % 32 != 0 this pad still copies x once in HBM;
        # a split main-body + tiny-tail call would avoid it.
        x2d = jnp.pad(x2d, ((0, n_pad - n), (0, 0)))
    xl = x2d.reshape(rows, lanes_in)             # pure metadata reshape when no pad

    # Tile selection: big blocks (default 256 sublane rows == 8192 boxes) to amortize
    # per-step overhead, shrunk so the grid keeps >= 4 steps when possible (megacore).
    tg_max = max(ROW_GRAN, (tile_boxes // BOX_PER_ROW // ROW_GRAN) * ROW_GRAN)
    tg = min(tg_max, max(ROW_GRAN, _round_up(pl.cdiv(rows, 4), ROW_GRAN)))
    grid = (pl.cdiv(rows, tg),)

    w = _make_projection_matrix(reg_max)

    out = pl.pallas_call(
        _integral_kernel,
        out_shape=jax.ShapeDtypeStruct((rows, LANES_OUT), x.dtype),
        grid_spec=pltpu.PrefetchScalarGridSpec(
            num_scalar_prefetch=0,
            grid=grid,
            in_specs=[
                pl.BlockSpec((tg, lanes_in), lambda i: (i, 0)),
                # Constant bf16 reduction matrix: same block every step -> fetched once.
                pl.BlockSpec((lanes_in, 2 * LANES_OUT), lambda i: (0, 0)),
            ],
            out_specs=pl.BlockSpec((tg, LANES_OUT), lambda i: (i, 0)),
        ),
        compiler_params=pltpu.CompilerParams(
            dimension_semantics=("parallel",)),
    )(xl, w)

    out = out.reshape(n_pad, 4)[:n]
    return out.reshape(b, nb, 4)


def _integral_ref(x, reg_max=REG_MAX):
    """Plain-JAX reference mirroring the PyTorch forward."""
    b, nb, _ = x.shape
    nbins = reg_max + 1
    xr = x.reshape(b, nb, 4, nbins).astype(jnp.float32)
    p = jax.nn.softmax(xr, axis=-1)
    proj = jnp.linspace(0.0, float(reg_max), nbins, dtype=jnp.float32)
    return jnp.einsum("bnek,k->bne", p, proj).astype(x.dtype)


if __name__ == "__main__":
    key = jax.random.PRNGKey(0)
    k1, k2 = jax.random.split(key)

    # Small shapes consistent with the module's forward: (B, N_boxes, 4*(reg_max+1)).
    x1 = jax.random.normal(k1, (2, 16, C_IN), dtype=jnp.float32)
    # Ragged box count (exercises the padding / partial-row path), wider logit range.
    x2 = jax.random.normal(k2, (2, 100, C_IN), dtype=jnp.float32) * 4.0

    for x, atol, rtol in ((x1, 3e-2, 1e-2), (x2, 3e-2, 1e-2)):
        out = jax.block_until_ready(integral(x))
        ref = _integral_ref(x)
        assert out.shape == x.shape[:2] + (4,)
        assert jnp.allclose(out, ref, atol=atol, rtol=rtol), float(
            jnp.max(jnp.abs(out - ref)))

    # bf16 end-to-end path (halves HBM traffic for bf16 detection heads).
    x3 = x2.astype(jnp.bfloat16)
    out3 = jax.block_until_ready(integral(x3))
    ref3 = _integral_ref(x3).astype(jnp.float32)
    assert jnp.allclose(out3.astype(jnp.float32), ref3, atol=2e-1, rtol=2e-2), float(
        jnp.max(jnp.abs(out3.astype(jnp.float32) - ref3)))

    print("KERNEL_OK")
</pallas_src>

<mosaic_0001>
module attributes {stable_mosaic.version = 11 : i64} {
  func.func @_integral_kernel(%arg0: i32, %arg1: memref<16x2176xf32, #tpu.memory_space<vmem>>, %arg2: memref<2176x256xbf16, #tpu.memory_space<vmem>>, %arg3: memref<16x128xf32, #tpu.memory_space<vmem>>) attributes {dimension_semantics = [#tpu.dimension_semantics<parallel>], iteration_bounds = array<i64: 1>, scalar_prefetch = 0 : i64, scratch_operands = 0 : i64, tpu.core_type = #tpu.core_type<tc>, window_params = [{transform_indices = @transform_0, window_bounds = array<i64: 16, 2176>}, {pipeline_mode = #tpu.pipeline_mode<synchronous>, transform_indices = @transform_1, window_bounds = array<i64: 2176, 256>}, {transform_indices = @transform_2, window_bounds = array<i64: 16, 128>}]} {
    %c0 = arith.constant 0 : index
    %c0_0 = arith.constant 0 : index
    %0 = vector.load %arg1[%c0, %c0_0] : memref<16x2176xf32, #tpu.memory_space<vmem>>, vector<16x2176xf32>
    %cst = arith.constant dense<0xFF800000> : vector<16xf32>
    %1 = vector.multi_reduction <maximumf>, %0, %cst [1] : vector<16x2176xf32> to vector<16xf32>
    %2 = vector.shape_cast %1 : vector<16xf32> to vector<16x1xf32>
    %3 = vector.broadcast %2 : vector<16x1xf32> to vector<16x2176xf32>
    %4 = arith.subf %0, %3 : vector<16x2176xf32>
    %cst_1 = arith.constant -7.500000e+01 : f32
    %5 = vector.broadcast %cst_1 : f32 to vector<16x2176xf32>
    %6 = arith.maximumf %4, %5 : vector<16x2176xf32>
    %7 = math.exp %6 : vector<16x2176xf32>
    %8 = arith.truncf %7 : vector<16x2176xf32> to vector<16x2176xbf16>
    %c0_2 = arith.constant 0 : index
    %c0_3 = arith.constant 0 : index
    %9 = vector.load %arg2[%c0_2, %c0_3] : memref<2176x256xbf16, #tpu.memory_space<vmem>>, vector<2176x256xbf16>
    %cst_4 = arith.constant dense<0.000000e+00> : vector<16x256xf32>
    %10 = tpu.matmul %8, %9, %cst_4 {dimension_numbers = #tpu.dot_dimension_numbers<[1], [0], [0], [1], [0, 0, 1, 1], [], []>} : vector<16x2176xbf16>, vector<2176x256xbf16>, vector<16x256xf32> -> vector<16x256xf32>
    %11 = vector.extract_strided_slice %10 {offsets = [0, 0], sizes = [16, 128], strides = [1, 1]} : vector<16x256xf32> to vector<16x128xf32>
    %12 = vector.extract_strided_slice %10 {offsets = [0, 128], sizes = [16, 128], strides = [1, 1]} : vector<16x256xf32> to vector<16x128xf32>
    %13 = tpu.reciprocal %11 {approx = true} : vector<16x128xf32> -> vector<16x128xf32>
    %14 = arith.mulf %12, %13 : vector<16x128xf32>
    %c0_5 = arith.constant 0 : index
    %c0_6 = arith.constant 0 : index
    %15 = vector.load %arg3[%c0_5, %c0_6] : memref<16x128xf32, #tpu.memory_space<vmem>>, vector<16x128xf32>
    tpu.vector_store %arg3[%c0_5, %c0_6], %14 {strides = array<i32>} : memref<16x128xf32, #tpu.memory_space<vmem>>, vector<16x128xf32>,
    return
  }
  func.func @transform_0(%arg0: i32) -> (i32, i32) {
    %c0_i32 = arith.constant 0 : i32
    %c0_i32_0 = arith.constant 0 : i32
    return %arg0, %c0_i32 : i32, i32
  }
  func.func @transform_1(%arg0: i32) -> (i32, i32) {
    %c0_i32 = arith.constant 0 : i32
    %c0_i32_0 = arith.constant 0 : i32
    %c0_i32_1 = arith.constant 0 : i32
    return %c0_i32, %c0_i32_0 : i32, i32
  }
  func.func @transform_2(%arg0: i32) -> (i32, i32) {
    %c0_i32 = arith.constant 0 : i32
    %c0_i32_0 = arith.constant 0 : i32
    return %arg0, %c0_i32 : i32, i32
  }
}

</mosaic_0001>

<bundles_post_ra>
// kernel: tpu_custom_call.1
= control target key start
LH: loop header
LB: loop body
LE: loop exit
PB: predicated region body
PF: predicated region fallthrough
CT: control target
= control target key end

     0   :  { %7 = vsyncpa [#allocation3], 0  ;;  %s3479_s0 = inlined_call_operand.hbm [shape: f32[16,2176], index: 0, kind: input, shape index: {}]   ;;  %s3480_s1 = inlined_call_operand.hbm [shape: bf16[2176,256], index: 1, kind: input, shape index: {}]   ;;  %s3481_s2 = inlined_call_operand.hbm [shape: f32[16,128], index: 2, kind: output, shape index: {}]  }
   0x1   :  { %8 = vsyncpa [#allocation6], 0 }
   0x2   :  { %9 = vsyncpa [#allocation4], 0  ;;  %s3183_s9 = smov [#allocation2]   ;;  %s3111_s13 = scalar_lea.hbm %s3479_s0, 4352 }
   0x3   :  { %s15_s10 = sshll.u32 %s3183_s9, 4  ;;  %p3112_p0 = scmp.ne.s32.totalorder %s3479_s0, %s3111_s13  ;;  %s16_s10 = int_to_ptr.vmem [resolvable:$true] %s15_s10 }
   0x4   :  { %p3115_p1 = scmp.lt.u32.totalorder %s3111_s13, %s3479_s0 }
   0x6   :  { %p3117_p2 = pnand %p3115_p1, %p3112_p0 }
   0x8   :  { %3120 = shalt.err (!%p3117_p2)
}
   0x9   :  { %s3121_s18 = scalar_lea.vmem %s16_s10, 4352  ;;  %p3126_p4 = scmp.lt.s32.totalorder %s16_s10, %s16_s10 }
   0xa   :  { %p3122_p3 = scmp.ne.s32.totalorder %s16_s10, %s3121_s18  ;;  %p3127_p5 = scmp.lt.s32.totalorder %s3121_s18, %s3121_s18 }
   0xc   :  { %p3128_p6 = por %p3127_p5, %p3126_p4 }
   0xe   :  { %p3129_p7 = pnand %p3128_p6, %p3122_p3 }
  0x10   :  { %3132 = shalt.err (!%p3129_p7)
}
  0x11   :  { %s3184_s19 = smov 2176   ;;  %s3185_s20 = smov 136  }
  0x12   :  { %21 = dma.hbm_to_vmem [thread:$0]  %s3479_s0, 4352, %s16_s10, [#allocation3], %s3184_s19, %s3184_s19, %s3185_s20  }
  0x13   :  { %s3186_s23 = smov [#allocation5]   ;;  %s3133_s27 = scalar_lea.hbm %s3480_s1, 34816 }
  0x14   :  { %s27_s24 = sshll.u32 %s3186_s23, 4  ;;  %p3134_p8 = scmp.ne.s32.totalorder %s3480_s1, %s3133_s27  ;;  %s28_s24 = int_to_ptr.vmem [resolvable:$true] %s27_s24 }
  0x15   :  { %p3137_p9 = scmp.lt.u32.totalorder %s3133_s27, %s3480_s1 }
  0x17   :  { %p3139_p10 = pnand %p3137_p9, %p3134_p8 }
  0x19   :  { %3142 = shalt.err (!%p3139_p10)
}
  0x1a   :  { %s3143_s4 = scalar_lea.vmem %s28_s24, 34816  ;;  %p3148_p12 = scmp.lt.s32.totalorder %s28_s24, %s28_s24 }
  0x1b   :  { %p3144_p11 = scmp.ne.s32.totalorder %s28_s24, %s3143_s4  ;;  %p3149_p13 = scmp.lt.s32.totalorder %s3143_s4, %s3143_s4 }
  0x1d   :  { %p3150_p0 = por %p3149_p13, %p3148_p12 }
  0x1f   :  { %p3151_p1 = pnand %p3150_p0, %p3144_p11 }
  0x21   :  { %3154 = shalt.err (!%p3151_p1)
}
  0x22   :  { %s3187_s0 = smov 128   ;;  %s3188_s5 = smov 8  }
  0x23   :  { %33 = dma.hbm_to_vmem [thread:$0]  %s3480_s1, 34816, %s28_s24, [#allocation6], %s3187_s0, %s3187_s0, %s3188_s5  }
  0x24   :  { %3177 = dma.done.wait [#allocation3], 4352  }
  0x25   :  { %3178 = vsyncadd [#allocation3], 4294962944 }
  0x26   :  { %3179 = dma.done.wait [#allocation6], 34816  }
  0x27   :  { %3180 = vsyncadd [#allocation6], 4294932480  ;;  %v3233_v0 = vld [vmem:[#allocation2] sm:$0xff]  ;;  %v3235_v1 = vld [vmem:[#allocation2 + $0x8] sm:$0xff]  ;;  %s3190_s1 = smov [#allocation7]  }
  0x28   :  { %v3237_v2 = vld [vmem:[#allocation2 + $0x10] sm:$0xff]  ;;  %v3239_v3 = vld [vmem:[#allocation2 + $0x18] sm:$0xff]  ;;  %v45_v4 = vld [vmem:[#allocation2 + $0x20] sm:$0xff]  ;;  %s2294_s8 = sshll.u32 %s3190_s1, 4  ;;  %s2295_s8 = int_to_ptr.vmem [resolvable:$true] %s2294_s8 }
  0x29   :  { %v3241_v5 = vld [vmem:[#allocation2 + $0x28] sm:$0xff]  ;;  %v75_v6 = vmax.f32 %v3233_v0, %v3237_v2  ;;  %v47_v7 = vld [vmem:[#allocation2 + $0x30] sm:$0xff]  ;;  %v76_v8 = vmax.f32 %v3235_v1, %v3239_v3  ;;  %v48_v9 = vld [vmem:[#allocation2 + $0x38] sm:$0xff]  ;;  %s3155_s9 = scalar_lea.vmem %s2295_s8, 256  ;;  %p3160_p3 = scmp.lt.s32.totalorder %s2295_s8, %s2295_s8 }
  0x2a   :  { %v3247_v11 = vld [vmem:[#allocation2 + $0x40] sm:$0xff]  ;;  %v3250_v13 = vld [vmem:[#allocation2 + $0x48] sm:$0xff]  ;;  %v3252_v14 = vld [vmem:[#allocation2 + $0x50] sm:$0xff]  ;;  %p3156_p2 = scmp.ne.s32.totalorder %s2295_s8, %s3155_s9  ;;  %p3161_p4 = scmp.lt.s32.totalorder %s3155_s9, %s3155_s9 }
  0x2b   :  { %v77_v10 = vmax.f32 %v75_v6, %v45_v4  ;;  %v78_v12 = vmax.f32 %v76_v8, %v3241_v5  ;;  %v3254_v16 = vld [vmem:[#allocation2 + $0x88] sm:$0xff]  ;;  %v3256_v18 = vld [vmem:[#allocation2 + $0x90] sm:$0xff]  ;;  %v3258_v19 = vld [vmem:[#allocation2 + $0x98] sm:$0xff] }
  0x2c   :  { %v3260_v20 = vld [vmem:[#allocation2 + $0xa0] sm:$0xff]  ;;  %v3262_v21 = vld [vmem:[#allocation2 + $0x58] sm:$0xff]  ;;  %v62_v23 = vld [vmem:[#allocation2 + $0xa8] sm:$0xff]  ;;  %v93_v25 = vmax.f32 %v3254_v16, %v3258_v19  ;;  %p3162_p5 = por %p3161_p4, %p3160_p3 }
  0x2d   :  { %v79_v15 = vmax.f32 %v77_v10, %v47_v7  ;;  %v80_v17 = vmax.f32 %v78_v12, %v48_v9  ;;  %v3265_v24 = vld [vmem:[#allocation2 + $0xb0] sm:$0xff]  ;;  %v94_v26 = vmax.f32 %v3256_v18, %v3260_v20  ;;  %v53_v27 = vld [vmem:[#allocation2 + $0x60] sm:$0xff]  ;;  %v64_v29 = vld [vmem:[#allocation2 + $0xb8] sm:$0xff] }
  0x2e   :  { %v65_v30 = vld [vmem:[#allocation2 + $0xc0] sm:$0xff]  ;;  %v3272_v31 = vld [vmem:[#allocation2 + $0x68] sm:$0xff]  ;;  %v55_v32 = vld [vmem:[#allocation2 + $0x70] sm:$0xff]  ;;  %v95_v35 = vmax.f32 %v93_v25, %v62_v23  ;;  %p3163_p6 = pnand %p3162_p5, %p3156_p2 }
  0x2f   :  { %v81_v22 = vmax.f32 %v79_v15, %v3247_v11  ;;  %v82_v28 = vmax.f32 %v80_v17, %v3250_v13  ;;  %v56_v33 = vld [vmem:[#allocation2 + $0x78] sm:$0xff]  ;;  %v96_v36 = vmax.f32 %v94_v26, %v3265_v24  ;;  %v57_v37 = vld [vmem:[#allocation2 + $0x80] sm:$0xff]  ;;  %v3277_v39 = vld [vmem:[#allocation2 + $0xc8] sm:$0xff] }
  0x30   :  { %v3279_v40 = vld [vmem:[#allocation2 + $0xd0] sm:$0xff]  ;;  %v3281_v41 = vld [vmem:[#allocation2 + $0xd8] sm:$0xff]  ;;  %v3283_v43 = vld [vmem:[#allocation2 + $0xe0] sm:$0xff]  ;;  %v97_v44 = vmax.f32 %v95_v35, %v64_v29 }
  0x31   :  { %v83_v34 = vmax.f32 %v81_v22, %v3252_v14  ;;  %v84_v38 = vmax.f32 %v82_v28, %v3262_v21  ;;  %v98_v45 = vmax.f32 %v96_v36, %v65_v30  ;;  %v3286_v47 = vld [vmem:[#allocation2 + $0xe8] sm:$0xff]  ;;  %v3288_v48 = vld [vmem:[#allocation2 + $0xf0] sm:$0xff]  ;;  %v72_v57 = vld [vmem:[#allocation2 + $0xf8] sm:$0xff] }
  0x32   :  { %v2619_v49 = vld [vmem:[#allocation5 + $0x4] ss:$8 sps:$4 sm:$0xff]   ;;  %v99_v51 = vmax.f32 %v97_v44, %v3277_v39  ;;  %v2623_v54 = vld [vmem:[#allocation5] ss:$8 sps:$4 sm:$0xff]   ;;  %v3292_v58 = vld [vmem:[#allocation2 + $0x100] sm:$0xff] }
  0x33   :  { %v85_v42 = vmax.f32 %v83_v34, %v53_v27  ;;  %v86_v46 = vmax.f32 %v84_v38, %v3272_v31  ;;  %v100_v52 = vmax.f32 %v98_v45, %v3279_v40  ;;  %v2621_v53 = vld [vmem:[#allocation5 + $0x404] ss:$8 sps:$4 sm:$0xff]   ;;  %v2624_v55 = vld [vmem:[#allocation5 + $0x400] ss:$8 sps:$4 sm:$0xff]   ;;  %1896 = vmatprep.subr.bf16.mxu1 %v2619_v49  ;;  %v2625_v59 = vld [vmem:[#allocation5 + $0x14] ss:$8 sps:$4 sm:$0xff]  }
  0x34   :  { %v101_v61 = vmax.f32 %v99_v51, %v3281_v41  ;;  %2068 = vmatprep.subr.bf16.mxu0 %v2621_v53  ;;  %1897 = vmatpush1.bf16.msra.mxu1 %v2623_v54  ;;  %v2627_v63 = vld [vmem:[#allocation5 + $0x414] ss:$8 sps:$4 sm:$0xff]   ;;  %v2629_v6 = vld [vmem:[#allocation5 + $0x10] ss:$8 sps:$4 sm:$0xff]   ;;  %v2631_v12 = vld [vmem:[#allocation5 + $0x24] ss:$8 sps:$4 sm:$0xff]  }
  0x35   :  { %v87_v50 = vmax.f32 %v85_v42, %v55_v32  ;;  %v88_v56 = vmax.f32 %v86_v46, %v56_v33  ;;  %v102_v62 = vmax.f32 %v100_v52, %v3283_v43  ;;  %v74_v4 = vld [vmem:[#allocation2 + $0x108] sm:$0xff]  ;;  %2069 = vmatpush1.bf16.msra.mxu0 %v2624_v55  ;;  %1898 = vmatprep.subr.bf16.mxu1 %v2625_v59  ;;  %v2633_v15 = vld [vmem:[#allocation5 + $0x424] ss:$8 sps:$4 sm:$0xff]   ;;  %v2635_v17 = vld [vmem:[#allocation5 + $0x20] ss:$8 sps:$4 sm:$0xff]  }
  0x36   :  { %v2630_v7 = vld [vmem:[#allocation5 + $0x410] ss:$8 sps:$4 sm:$0xff]   ;;  %v103_v9 = vmax.f32 %v101_v61, %v3286_v47  ;;  %2070 = vmatprep.subr.bf16.mxu0 %v2627_v63  ;;  %v2636_v25 = vld [vmem:[#allocation5 + $0x420] ss:$8 sps:$4 sm:$0xff]   ;;  %v2637_v26 = vld [vmem:[#allocation5 + $0x34] ss:$8 sps:$4 sm:$0xff]  }
  0x37   :  { %v89_v60 = vmax.f32 %v87_v50, %v57_v37  ;;  %v104_v10 = vmax.f32 %v102_v62, %v3288_v48  ;;  %v2639_v28 = vld [vmem:[#allocation5 + $0x434] ss:$8 sps:$4 sm:$0xff]   ;;  %v2641_v30 = vld [vmem:[#allocation5 + $0x30] ss:$8 sps:$4 sm:$0xff]   ;;  %v2643_v33 = vld [vmem:[#allocation5 + $0x44] ss:$8 sps:$4 sm:$0xff]  }
  0x38   :  { %v105_v22 = vmax.f32 %v103_v9, %v72_v57  ;;  %1899 = vmatpush1.bf16.msra.mxu1 %v2629_v6  ;;  %v2642_v32 = vld [vmem:[#allocation5 + $0x430] ss:$8 sps:$4 sm:$0xff]   ;;  %v2645_v34 = vld [vmem:[#allocation5 + $0x444] ss:$8 sps:$4 sm:$0xff]   ;;  %v2647_v35 = vld [vmem:[#allocation5 + $0x40] ss:$8 sps:$4 sm:$0xff]  }
  0x39   :  { %v90_v8 = vmax.f32 %v89_v60, %v88_v56  ;;  %v106_v23 = vmax.f32 %v104_v10, %v3292_v58  ;;  %2071 = vmatpush1.bf16.msra.mxu0 %v2630_v7  ;;  %1900 = vmatprep.subr.bf16.mxu1 %v2631_v12  ;;  %v2648_v36 = vld [vmem:[#allocation5 + $0x440] ss:$8 sps:$4 sm:$0xff]   ;;  %v2649_v37 = vld [vmem:[#allocation5 + $0x54] ss:$8 sps:$4 sm:$0xff]   ;;  %v2653_v42 = vld [vmem:[#allocation5 + $0x50] ss:$8 sps:$4 sm:$0xff]  }
  0x3a   :  { %v107_v27 = vmax.f32 %v105_v22, %v74_v4  ;;  %2072 = vmatprep.subr.bf16.mxu0 %v2633_v15  ;;  %v2651_v38 = vld [vmem:[#allocation5 + $0x454] ss:$8 sps:$4 sm:$0xff]   ;;  %v2654_v44 = vld [vmem:[#allocation5 + $0x450] ss:$8 sps:$4 sm:$0xff]   ;;  %v2655_v45 = vld [vmem:[#allocation5 + $0x64] ss:$8 sps:$4 sm:$0xff]  }
  0x3b   :  { %91 = vmax.xlane.f32.xlu0 %v90_v8  ;;  %v2657_v46 = vld [vmem:[#allocation5 + $0x464] ss:$8 sps:$4 sm:$0xff]   ;;  %v2659_v49 = vld [vmem:[#allocation5 + $0x60] ss:$8 sps:$4 sm:$0xff]   ;;  %v2661_v51 = vld [vmem:[#allocation5 + $0x74] ss:$8 sps:$4 sm:$0xff]  }
  0x3c   :  { %v108_v29 = vmax.f32 %v107_v27, %v106_v23  ;;  %1901 = vmatpush1.bf16.msra.mxu1 %v2635_v17  ;;  %v2660_v50 = vld [vmem:[#allocation5 + $0x460] ss:$8 sps:$4 sm:$0xff]   ;;  %v2663_v52 = vld [vmem:[#allocation5 + $0x474] ss:$8 sps:$4 sm:$0xff]   ;;  %v2665_v53 = vld [vmem:[#allocation5 + $0x70] ss:$8 sps:$4 sm:$0xff]  }
  0x3d   :  { %2073 = vmatpush1.bf16.msra.mxu0 %v2636_v25  ;;  %1902 = vmatprep.subr.bf16.mxu1 %v2637_v26  ;;  %v2666_v54 = vld [vmem:[#allocation5 + $0x470] ss:$8 sps:$4 sm:$0xff]   ;;  %v2667_v55 = vld [vmem:[#allocation5 + $0x84] ss:$8 sps:$4 sm:$0xff]   ;;  %v2671_v57 = vld [vmem:[#allocation5 + $0x80] ss:$8 sps:$4 sm:$0xff]  }
  0x3e   :  { %2074 = vmatprep.subr.bf16.mxu0 %v2639_v28  ;;  %v2669_v56 = vld [vmem:[#allocation5 + $0x484] ss:$8 sps:$4 sm:$0xff]   ;;  %v2672_v59 = vld [vmem:[#allocation5 + $0x480] ss:$8 sps:$4 sm:$0xff]   ;;  %v2673_v60 = vld [vmem:[#allocation5 + $0x94] ss:$8 sps:$4 sm:$0xff]  }
  0x3f   :  { %109 = vmax.xlane.f32.xlu0 %v108_v29  ;;  %v2675_v61 = vld [vmem:[#allocation5 + $0x494] ss:$8 sps:$4 sm:$0xff]   ;;  %v2677_v62 = vld [vmem:[#allocation5 + $0x90] ss:$8 sps:$4 sm:$0xff]   ;;  %v2679_v4 = vld [vmem:[#allocation5 + $0xa4] ss:$8 sps:$4 sm:$0xff]  }
  0x40   :  { %1903 = vmatpush1.bf16.msra.mxu1 %v2641_v30  ;;  %v2678_v63 = vld [vmem:[#allocation5 + $0x490] ss:$8 sps:$4 sm:$0xff]   ;;  %v2681_v6 = vld [vmem:[#allocation5 + $0x4a4] ss:$8 sps:$4 sm:$0xff]   ;;  %v2683_v7 = vld [vmem:[#allocation5 + $0xa0] ss:$8 sps:$4 sm:$0xff]  }
  0x41   :  { %2075 = vmatpush1.bf16.msra.mxu0 %v2642_v32  ;;  %1904 = vmatprep.subr.bf16.mxu1 %v2643_v33  ;;  %v2684_v8 = vld [vmem:[#allocation5 + $0x4a0] ss:$8 sps:$4 sm:$0xff]   ;;  %v2685_v9 = vld [vmem:[#allocation5 + $0xb4] ss:$8 sps:$4 sm:$0xff]   ;;  %v2689_v12 = vld [vmem:[#allocation5 + $0xb0] ss:$8 sps:$4 sm:$0xff]  }
  0x42   :  { %2076 = vmatprep.subr.bf16.mxu0 %v2645_v34  ;;  %v2687_v10 = vld [vmem:[#allocation5 + $0x4b4] ss:$8 sps:$4 sm:$0xff]   ;;  %v2690_v15 = vld [vmem:[#allocation5 + $0x4b0] ss:$8 sps:$4 sm:$0xff]   ;;  %v2691_v17 = vld [vmem:[#allocation5 + $0xc4] ss:$8 sps:$4 sm:$0xff]  }
  0x43   :  { %v2693_v22 = vld [vmem:[#allocation5 + $0x4c4] ss:$8 sps:$4 sm:$0xff]   ;;  %v2695_v23 = vld [vmem:[#allocation5 + $0xc0] ss:$8 sps:$4 sm:$0xff]   ;;  %v2697_v26 = vld [vmem:[#allocation5 + $0xd4] ss:$8 sps:$4 sm:$0xff]  }
  0x44   :  { %1905 = vmatpush1.bf16.msra.mxu1 %v2647_v35  ;;  %v2696_v25 = vld [vmem:[#allocation5 + $0x4c0] ss:$8 sps:$4 sm:$0xff]   ;;  %v2699_v27 = vld [vmem:[#allocation5 + $0x4d4] ss:$8 sps:$4 sm:$0xff]   ;;  %v2701_v28 = vld [vmem:[#allocation5 + $0xd0] ss:$8 sps:$4 sm:$0xff]  }
  0x45   :  { %2077 = vmatpush1.bf16.msra.mxu0 %v2648_v36  ;;  %1906 = vmatprep.subr.bf16.mxu1 %v2649_v37  ;;  %v2702_v29 = vld [vmem:[#allocation5 + $0x4d0] ss:$8 sps:$4 sm:$0xff]   ;;  %v2703_v30 = vld [vmem:[#allocation5 + $0xe4] ss:$8 sps:$4 sm:$0xff]   ;;  %v2707_v33 = vld [vmem:[#allocation5 + $0xe0] ss:$8 sps:$4 sm:$0xff]  }
  0x46   :  { %2078 = vmatprep.subr.bf16.mxu0 %v2651_v38  ;;  %v2705_v32 = vld [vmem:[#allocation5 + $0x4e4] ss:$8 sps:$4 sm:$0xff]   ;;  %v2708_v34 = vld [vmem:[#allocation5 + $0x4e0] ss:$8 sps:$4 sm:$0xff]   ;;  %v2709_v35 = vld [vmem:[#allocation5 + $0xf4] ss:$8 sps:$4 sm:$0xff]  }
  0x47   :  { %v2711_v36 = vld [vmem:[#allocation5 + $0x4f4] ss:$8 sps:$4 sm:$0xff]   ;;  %v2713_v37 = vld [vmem:[#allocation5 + $0xf0] ss:$8 sps:$4 sm:$0xff]  }
  0x48   :  { %1907 = vmatpush1.bf16.msra.mxu1 %v2653_v42  ;;  %v2714_v38 = vld [vmem:[#allocation5 + $0x4f0] ss:$8 sps:$4 sm:$0xff]   ;;  %v2717_v42 = vld [vmem:[#allocation5 + $0x104] ss:$8 sps:$4 sm:$0xff]  }
  0x49   :  { %2079 = vmatpush1.bf16.msra.mxu0 %v2654_v44  ;;  %1908 = vmatprep.subr.bf16.mxu1 %v2655_v45  ;;  %v2720_v44 = vld [vmem:[#allocation5 + $0x504] ss:$8 sps:$4 sm:$0xff]  }
  0x4a   :  { %2080 = vmatprep.subr.bf16.mxu0 %v2657_v46 }
  0x4c   :  { %1909 = vmatpush1.bf16.msra.mxu1 %v2659_v49 }
  0x4d   :  { %2081 = vmatpush1.bf16.msra.mxu0 %v2660_v50  ;;  %1910 = vmatprep.subr.bf16.mxu1 %v2661_v51 }
  0x4e   :  { %2082 = vmatprep.subr.bf16.mxu0 %v2663_v52 }
  0x50   :  { %1911 = vmatpush1.bf16.msra.mxu1 %v2665_v53 }
  0x51   :  { %2083 = vmatpush1.bf16.msra.mxu0 %v2666_v54  ;;  %1912 = vmatprep.subr.bf16.mxu1 %v2667_v55 }
  0x52   :  { %2084 = vmatprep.subr.bf16.mxu0 %v2669_v56 }
  0x54   :  { %1913 = vmatpush1.bf16.msra.mxu1 %v2671_v57 }
  0x55   :  { %2085 = vmatpush1.bf16.msra.mxu0 %v2672_v59  ;;  %1914 = vmatprep.subr.bf16.mxu1 %v2673_v60 }
  0x56   :  { %2086 = vmatprep.subr.bf16.mxu0 %v2675_v61 }
  0x58   :  { %1915 = vmatpush1.bf16.msra.mxu1 %v2677_v62 }
  0x59   :  { %2087 = vmatpush1.bf16.msra.mxu0 %v2678_v63  ;;  %1916 = vmatprep.subr.bf16.mxu1 %v2679_v4 }
  0x5a   :  { %2088 = vmatprep.subr.bf16.mxu0 %v2681_v6 }
  0x5c   :  { %1917 = vmatpush1.bf16.msra.mxu1 %v2683_v7 }
  0x5d   :  { %2089 = vmatpush1.bf16.msra.mxu0 %v2684_v8  ;;  %1918 = vmatprep.subr.bf16.mxu1 %v2685_v9 }
  0x5e   :  { %2090 = vmatprep.subr.bf16.mxu0 %v2687_v10 }
  0x60   :  { %1919 = vmatpush1.bf16.msra.mxu1 %v2689_v12 }
  0x61   :  { %2091 = vmatpush1.bf16.msra.mxu0 %v2690_v15  ;;  %1920 = vmatprep.subr.bf16.mxu1 %v2691_v17 }
  0x62   :  { %2092 = vmatprep.subr.bf16.mxu0 %v2693_v22 }
  0x64   :  { %1921 = vmatpush1.bf16.msra.mxu1 %v2695_v23 }
  0x65   :  { %2093 = vmatpush1.bf16.msra.mxu0 %v2696_v25  ;;  %1922 = vmatprep.subr.bf16.mxu1 %v2697_v26 }
  0x66   :  { %2094 = vmatprep.subr.bf16.mxu0 %v2699_v27 }
  0x68   :  { %1923 = vmatpush1.bf16.msra.mxu1 %v2701_v28 }
  0x69   :  { %2095 = vmatpush1.bf16.msra.mxu0 %v2702_v29  ;;  %1924 = vmatprep.subr.bf16.mxu1 %v2703_v30 }
  0x6a   :  { %2096 = vmatprep.subr.bf16.mxu0 %v2705_v32 }
  0x6c   :  { %1925 = vmatpush1.bf16.msra.mxu1 %v2707_v33 }
  0x6d   :  { %2097 = vmatpush1.bf16.msra.mxu0 %v2708_v34  ;;  %1926 = vmatprep.subr.bf16.mxu1 %v2709_v35 }
  0x6e   :  { %2098 = vmatprep.subr.bf16.mxu0 %v2711_v36 }
  0x70   :  { %1927 = vmatpush1.bf16.msra.mxu1 %v2713_v37 }
  0x71   :  { %2099 = vmatpush1.bf16.msra.mxu0 %v2714_v38  ;;  %1939 = vmatprep.subr.bf16.mxu1 %v2717_v42 }
  0x72   :  { %2111 = vmatprep.subr.bf16.mxu0 %v2720_v44 }
  0xc8   :  { %v3299_v45 = vpop.xlane.xlu0 %91 }
  0xc9   :  { %v112_v46 = vsub.f32 %v3235_v1, %v3299_v45  ;;  %v120_v49 = vsub.f32 %v3250_v13, %v3299_v45  ;;  %v111_v50 = vsub.f32 %v3233_v0, %v3299_v45  ;;  %v119_v51 = vsub.f32 %v3247_v11, %v3299_v45 }
  0xca   :  { %v114_v52 = vsub.f32 %v3239_v3, %v3299_v45  ;;  %v122_v53 = vsub.f32 %v3262_v21, %v3299_v45  ;;  %v113_v54 = vsub.f32 %v3237_v2, %v3299_v45  ;;  %v121_v1 = vsub.f32 %v3252_v14, %v3299_v45 }
  0xcb   :  { %v146_v55 = vmax.f32 %v112_v46, -75.0  ;;  %v154_v13 = vmax.f32 %v120_v49, -75.0  ;;  %v145_v56 = vmax.f32 %v111_v50, -75.0  ;;  %v153_v57 = vmax.f32 %v119_v51, -75.0  ;;  %v3099_v50 = vld [vmem:[#allocation2 + $0x20] sm:$0xff] }
  0xcc   :  { %v148_v0 = vmax.f32 %v114_v52, -75.0  ;;  %v156_v59 = vmax.f32 %v122_v53, -75.0  ;;  %v147_v60 = vmax.f32 %v113_v54, -75.0  ;;  %v155_v11 = vmax.f32 %v121_v1, -75.0  ;;  %v3319_v63 = vpop.xlane.xlu0 %109  ;;  %v3101_v1 = vld [vmem:[#allocation2 + $0x60] sm:$0xff] }
  0xcd   :  { %v181_v61 = vmul.f32 1.442695, %v146_v55  ;;  %v197_v62 = vmul.f32 1.442695, %v154_v13  ;;  %v179_v3 = vmul.f32 1.442695, %v145_v56  ;;  %v116_v21 = vsub.f32 %v3241_v5, %v3299_v45 }
  0xce   :  { %v195_v2 = vmul.f32 1.442695, %v153_v57  ;;  %v185_v4 = vmul.f32 1.442695, %v148_v0  ;;  %v201_v6 = vmul.f32 1.442695, %v156_v59  ;;  %v124_v14 = vsub.f32 %v3272_v31, %v3299_v45 }
  0xcf   :  { %v129_v7 = vsub.f32 %v3256_v18, %v3319_v63  ;;  %3027 = vpow2.f32 %v181_v61  ;;  %v137_v8 = vsub.f32 %v3279_v40, %v3319_v63  ;;  %v128_v9 = vsub.f32 %v3254_v16, %v3319_v63  ;;  %v3102_v0 = vld [vmem:[#allocation2 + $0x38] sm:$0xff] }
  0xd0   :  { %3029 = vpow2.f32 %v197_v62  ;;  %v136_v5 = vsub.f32 %v3277_v39, %v3319_v63  ;;  %v131_v10 = vsub.f32 %v3260_v20, %v3319_v63  ;;  %v139_v31 = vsub.f32 %v3283_v43, %v3319_v63  ;;  %v3103_v62 = vld [vmem:[#allocation2 + $0xc0] sm:$0xff] }
  0xd1   :  { %v163_v12 = vmax.f32 %v129_v7, -75.0  ;;  %v171_v15 = vmax.f32 %v137_v8, -75.0  ;;  %v162_v18 = vmax.f32 %v128_v9, -75.0  ;;  %3031 = vpow2.f32 %v179_v3 }
  0xd2   :  { %v170_v17 = vmax.f32 %v136_v5, -75.0  ;;  %3033 = vpow2.f32 %v195_v2  ;;  %v165_v40 = vmax.f32 %v131_v10, -75.0  ;;  %v173_v22 = vmax.f32 %v139_v31, -75.0  ;;  %v3104_v2 = vld [vmem:[#allocation2 + $0x78] sm:$0xff] }
  0xd3   :  { %v215_v23 = vmul.f32 1.442695, %v163_v12  ;;  %v231_v16 = vmul.f32 1.442695, %v171_v15  ;;  %v213_v25 = vmul.f32 1.442695, %v162_v18  ;;  %3035 = vpow2.f32 %v185_v4 }
  0xd4   :  { %v229_v26 = vmul.f32 1.442695, %v170_v17  ;;  %v219_v39 = vmul.f32 1.442695, %v165_v40  ;;  %3037 = vpow2.f32 %v201_v6  ;;  %v235_v27 = vmul.f32 1.442695, %v173_v22 }
  0xd5   :  { %3039 = vpow2.f32 %v215_v23  ;;  %v130_v20 = vsub.f32 %v3258_v19, %v3319_v63  ;;  %v183_v43 = vmul.f32 1.442695, %v147_v60  ;;  %v138_v28 = vsub.f32 %v3281_v41, %v3319_v63  ;;  %v3105_v6 = vld [vmem:[#allocation2 + $0x30] sm:$0xff]  ;;  %v3106_v5 = vld [vmem:[#allocation2 + $0xb8] sm:$0xff] }
  0xd6   :  { %3041 = vpow2.f32 %v231_v16  ;;  %v199_v29 = vmul.f32 1.442695, %v155_v11  ;;  %v133_v30 = vsub.f32 %v3265_v24, %v3319_v63  ;;  %v150_v32 = vmax.f32 %v116_v21, -75.0  ;;  %v2715_v40 = vld [vmem:[#allocation5 + $0x100] ss:$8 sps:$4 sm:$0xff]  }
  0xd7   :  { %3043 = vpow2.f32 %v213_v25  ;;  %v164_v33 = vmax.f32 %v130_v20, -75.0  ;;  %v172_v34 = vmax.f32 %v138_v28, -75.0  ;;  %v141_v35 = vsub.f32 %v3288_v48, %v3319_v63  ;;  %v3100_v48 = vld [vmem:[#allocation2 + $0xa8] sm:$0xff]  ;;  %v2718_v25 = vld [vmem:[#allocation5 + $0x500] ss:$8 sps:$4 sm:$0xff]  }
  0xd8   :  { %3045 = vpow2.f32 %v229_v26  ;;  %v167_v36 = vmax.f32 %v133_v30, -75.0  ;;  %v189_v37 = vmul.f32 1.442695, %v150_v32  ;;  %v158_v19 = vmax.f32 %v124_v14, -75.0  ;;  %v2723_v28 = vld [vmem:[#allocation5 + $0x114] ss:$8 sps:$4 sm:$0xff]  }
  0xd9   :  { %v3028_v38 = vpop.eup %3027  ;;  %3047 = vpow2.f32 %v219_v39  ;;  %v217_v42 = vmul.f32 1.442695, %v164_v33  ;;  %v233_v41 = vmul.f32 1.442695, %v172_v34  ;;  %v175_v44 = vmax.f32 %v141_v35, -75.0 }
  0xda   :  { %v3030_v46 = vpop.eup %3029  ;;  %3049 = vpow2.f32 %v235_v27  ;;  %v223_v49 = vmul.f32 1.442695, %v167_v36  ;;  %v205_v24 = vmul.f32 1.442695, %v158_v19  ;;  %v115_v51 = vsub.f32 %v3099_v50, %v3299_v45  ;;  %v2721_v34 = vld [vmem:[#allocation5 + $0x110] ss:$8 sps:$4 sm:$0xff]  }
  0xdb   :  { %v3032_v52 = vpop.eup %3031  ;;  %3051 = vpow2.f32 %v183_v43  ;;  %v239_v53 = vmul.f32 1.442695, %v175_v44  ;;  %v132_v54 = vsub.f32 %v3100_v48, %v3319_v63  ;;  %v123_v55 = vsub.f32 %v3101_v1, %v3299_v45  ;;  %v2726_v35 = vld [vmem:[#allocation5 + $0x514] ss:$8 sps:$4 sm:$0xff]   ;;  %v2732_v48 = vld [vmem:[#allocation5 + $0x524] ss:$8 sps:$4 sm:$0xff]  }
  0xdc   :  { %v3034_v13 = vpop.eup %3033  ;;  %3053 = vpow2.f32 %v217_v42  ;;  %v149_v56 = vmax.f32 %v115_v51, -75.0  ;;  %v140_v57 = vsub.f32 %v3286_v47, %v3319_v63  ;;  %v118_v59 = vsub.f32 %v3102_v0, %v3299_v45  ;;  %v2724_v42 = vld [vmem:[#allocation5 + $0x510] ss:$8 sps:$4 sm:$0xff]   ;;  %v3108_v1 = vld [vmem:[#allocation2 + $0xf8] sm:$0xff] }
  0xdd   :  { %v3349_v60 = vpop.eup %3035  ;;  %3055 = vpow2.f32 %v199_v29  ;;  %v166_v11 = vmax.f32 %v132_v54, -75.0  ;;  %v157_v61 = vmax.f32 %v123_v55, -75.0  ;;  %v135_v3 = vsub.f32 %v3103_v62, %v3319_v63  ;;  %v2727_v62 = vld [vmem:[#allocation5 + $0x120] ss:$8 sps:$4 sm:$0xff]  }
  0xde   :  { %v3352_v21 = vpop.eup %3037  ;;  %3057 = vpow2.f32 %v233_v41  ;;  %v126_v4 = vsub.f32 %v3104_v2, %v3299_v45  ;;  %v143_v47 = vsub.f32 %v3292_v58, %v3319_v63  ;;  %v117_v14 = vsub.f32 %v3105_v6, %v3299_v45  ;;  %v2729_v41 = vld [vmem:[#allocation5 + $0x124] ss:$8 sps:$4 sm:$0xff]  }
  0xdf   :  { %v3040_v7 = vpop.eup %3039  ;;  %3059 = vpow2.f32 %v189_v37  ;;  %v187_v8 = vmul.f32 1.442695, %v149_v56  ;;  %v221_v9 = vmul.f32 1.442695, %v166_v11  ;;  %v134_v10 = vsub.f32 %v3106_v5, %v3319_v63 }
  0xe0   :  { %v3042_v31 = vpop.eup %3041  ;;  %v248_v12 = vpack.c.bf16 %v3040_v7, %v3028_v38  ;;  %3061 = vpow2.f32 %v223_v49  ;;  %v174_v15 = vmax.f32 %v140_v57, -75.0  ;;  %v203_v18 = vmul.f32 1.442695, %v157_v61 }
  0xe1   :  { %v3044_v17 = vpop.eup %3043  ;;  %v256_v22 = vpack.c.bf16 %v3042_v31, %v3030_v46  ;;  %3063 = vpow2.f32 %v205_v24  ;;  %v152_v58 = vmax.f32 %v118_v59, -75.0  ;;  %v169_v23 = vmax.f32 %v135_v3, -75.0  ;;  %v3107_v46 = vld [vmem:[#allocation2 + $0x70] sm:$0xff] }
  0xe2   :  { %v3046_v16 = vpop.eup %3045  ;;  %1928 = vmatprep.mubr.bf16.mxu1 %v248_v12  ;;  %v247_v26 = vpack.c.bf16 %v3044_v17, %v3032_v52  ;;  %3065 = vpow2.f32 %v239_v53  ;;  %v237_v39 = vmul.f32 1.442695, %v174_v15  ;;  %v160_v27 = vmax.f32 %v126_v4, -75.0  ;;  %v2730_v4 = vld [vmem:[#allocation5 + $0x520] ss:$8 sps:$4 sm:$0xff]  }
  0xe3   :  { %v3048_v20 = vpop.eup %3047  ;;  %2100 = vmatprep.mubr.bf16.mxu0 %v256_v22  ;;  %v255_v43 = vpack.c.bf16 %v3046_v16, %v3034_v13  ;;  %3067 = vpow2.f32 %v187_v8  ;;  %v193_v29 = vmul.f32 1.442695, %v152_v58  ;;  %v227_v30 = vmul.f32 1.442695, %v169_v23  ;;  %v3109_v13 = vld [vmem:[#allocation2 + $0x80] sm:$0xff] }
  0xe4   :  { %v3050_v32 = vpop.eup %3049  ;;  %1929 = vmatmul.mubr.bf16.vlgmr.msra.gmra.mrb[0].mxu1 %v247_v26  ;;  %v250_v33 = vpack.c.bf16 %v3048_v20, %v3349_v60  ;;  %3069 = vpow2.f32 %v221_v9  ;;  %v177_v36 = vmax.f32 %v143_v47, -75.0  ;;  %v151_v37 = vmax.f32 %v117_v14, -75.0  ;;  %v3110_v60 = vld [vmem:[#allocation2 + $0x108] sm:$0xff]  ;;  %v2744_v58 = vld [vmem:[#allocation5 + $0x544] ss:$8 sps:$4 sm:$0xff]  }
  0xe5   :  { %v3360_v19 = vpop.eup %3051  ;;  %1940 = vmatpush1.bf16.msra.mxu1 %v2715_v40  ;;  %2101 = vmatmul.mubr.bf16.vlgmr.msra.gmra.mrb[0].mxu0 %v255_v43  ;;  %v258_v38 = vpack.c.bf16 %v3050_v32, %v3352_v21  ;;  %3071 = vpow2.f32 %v203_v18  ;;  %v209_v44 = vmul.f32 1.442695, %v160_v27  ;;  %v125_v49 = vsub.f32 %v3107_v46, %v3299_v45  ;;  %v2735_v47 = vld [vmem:[#allocation5 + $0x134] ss:$8 sps:$4 sm:$0xff]   ;;  %v2733_v12 = vld [vmem:[#allocation5 + $0x130] ss:$8 sps:$4 sm:$0xff]  }
  0xe6   :  { %v3364_v24 = vpop.eup %3053  ;;  %2112 = vmatpush1.bf16.msra.mxu0 %v2718_v25  ;;  %1971 = vmatprep.mubr.bf16.mxu1 %v250_v33  ;;  %3073 = vpow2.f32 %v237_v39  ;;  %v243_v50 = vmul.f32 1.442695, %v177_v36  ;;  %v168_v51 = vmax.f32 %v134_v10, -75.0  ;;  %v191_v52 = vmul.f32 1.442695, %v151_v37 }
  0xe7   :  { %v3366_v53 = vpop.eup %3055  ;;  %2143 = vmatprep.mubr.bf16.mxu0 %v258_v38  ;;  %1941 = vmatprep.subr.bf16.mxu1 %v2723_v28  ;;  %v249_v54 = vpack.c.bf16 %v3364_v24, %v3360_v19  ;;  %3075 = vpow2.f32 %v193_v29  ;;  %v142_v55 = vsub.f32 %v3108_v1, %v3319_v63  ;;  %v127_v56 = vsub.f32 %v3109_v13, %v3299_v45  ;;  %v2736_v17 = vld [vmem:[#allocation5 + $0x530] ss:$8 sps:$4 sm:$0xff]   ;;  %v2741_v40 = vld [vmem:[#allocation5 + $0x144] ss:$8 sps:$4 sm:$0xff]   ;;  %v2739_v39 = vld [vmem:[#allocation5 + $0x140] ss:$8 sps:$4 sm:$0xff]  }
  0xe8   :  { %v3372_v57 = vpop.eup %3057  ;;  %2113 = vmatprep.subr.bf16.mxu0 %v2726_v35  ;;  %3077 = vpow2.f32 %v227_v30  ;;  %v225_v0 = vmul.f32 1.442695, %v168_v51  ;;  %v159_v59 = vmax.f32 %v125_v49, -75.0  ;;  %v144_v11 = vsub.f32 %v3110_v60, %v3319_v63  ;;  %v2738_v63 = vld [vmem:[#allocation5 + $0x534] ss:$8 sps:$4 sm:$0xff]  }
  0xe9   :  { %v3375_v61 = vpop.eup %3059  ;;  %1942 = vmatpush1.bf16.msra.mxu1 %v2721_v34  ;;  %v257_v3 = vpack.c.bf16 %v3372_v57, %v3366_v53  ;;  %3079 = vpow2.f32 %v209_v44  ;;  %v176_v21 = vmax.f32 %v142_v55, -75.0  ;;  %v161_v2 = vmax.f32 %v127_v56, -75.0  ;;  %v2742_v43 = vld [vmem:[#allocation5 + $0x540] ss:$8 sps:$4 sm:$0xff]   ;;  %v2747_v28 = vld [vmem:[#allocation5 + $0x154] ss:$8 sps:$4 sm:$0xff]  }
  0xea   :  { %v3379_v45 = vpop.eup %3061  ;;  %2114 = vmatpush1.bf16.msra.mxu0 %v2724_v42  ;;  %1943 = vmatprep.subr.bf16.mxu1 %v2729_v41  ;;  %3081 = vpow2.f32 %v243_v50  ;;  %v207_v7 = vmul.f32 1.442695, %v159_v59  ;;  %v178_v5 = vmax.f32 %v144_v11, -75.0  ;;  %v2750_v30 = vld [vmem:[#allocation5 + $0x554] ss:$8 sps:$4 sm:$0xff]  }
  0xeb   :  { %v3381_v6 = vpop.eup %3063  ;;  %2115 = vmatprep.subr.bf16.mxu0 %v2732_v48  ;;  %v252_v14 = vpack.c.bf16 %v3379_v45, %v3375_v61  ;;  %3083 = vpow2.f32 %v191_v52  ;;  %v241_v8 = vmul.f32 1.442695, %v176_v21  ;;  %v211_v10 = vmul.f32 1.442695, %v161_v2  ;;  %v2745_v35 = vld [vmem:[#allocation5 + $0x150] ss:$8 sps:$4 sm:$0xff]  }
  0xec   :  { %v3385_v9 = vpop.eup %3065  ;;  %3085 = vpow2.f32 %v225_v0  ;;  %v245_v16 = vmul.f32 1.442695, %v178_v5  ;;  %v2748_v38 = vld [vmem:[#allocation5 + $0x550] ss:$8 sps:$4 sm:$0xff]   ;;  %v2753_v42 = vld [vmem:[#allocation5 + $0x164] ss:$8 sps:$4 sm:$0xff]  }
  0xed   :  { %v3387_v31 = vpop.eup %3067  ;;  %1944 = vmatpush1.bf16.msra.mxu1 %v2727_v62  ;;  %v260_v15 = vpack.c.bf16 %v3385_v9, %v3381_v6  ;;  %3087 = vpow2.f32 %v207_v7  ;;  %v2756_v44 = vld [vmem:[#allocation5 + $0x564] ss:$8 sps:$4 sm:$0xff]   ;;  %v2751_v50 = vld [vmem:[#allocation5 + $0x160] ss:$8 sps:$4 sm:$0xff]   ;;  %v2759_v1 = vld [vmem:[#allocation5 + $0x174] ss:$8 sps:$4 sm:$0xff]  }
  0xee   :  { %v3391_v18 = vpop.eup %3069  ;;  %2116 = vmatpush1.bf16.msra.mxu0 %v2730_v4  ;;  %1945 = vmatprep.subr.bf16.mxu1 %v2735_v47  ;;  %3089 = vpow2.f32 %v241_v8  ;;  %v2754_v48 = vld [vmem:[#allocation5 + $0x560] ss:$8 sps:$4 sm:$0xff]   ;;  %v2762_v13 = vld [vmem:[#allocation5 + $0x574] ss:$8 sps:$4 sm:$0xff]   ;;  %v2757_v0 = vld [vmem:[#allocation5 + $0x170] ss:$8 sps:$4 sm:$0xff]  }
  0xef   :  { %v3393_v22 = vpop.eup %3071  ;;  %2117 = vmatprep.subr.bf16.mxu0 %v2738_v63  ;;  %v251_v23 = vpack.c.bf16 %v3391_v18, %v3387_v31  ;;  %3091 = vpow2.f32 %v211_v10  ;;  %v2760_v59 = vld [vmem:[#allocation5 + $0x570] ss:$8 sps:$4 sm:$0xff]   ;;  %v2765_v60 = vld [vmem:[#allocation5 + $0x184] ss:$8 sps:$4 sm:$0xff]   ;;  %v2763_v62 = vld [vmem:[#allocation5 + $0x180] ss:$8 sps:$4 sm:$0xff]  }
  0xf0   :  { %v3397_v25 = vpop.eup %3073  ;;  %3093 = vpow2.f32 %v245_v16  ;;  %v2768_v11 = vld [vmem:[#allocation5 + $0x584] ss:$8 sps:$4 sm:$0xff]   ;;  %v2766_v21 = vld [vmem:[#allocation5 + $0x580] ss:$8 sps:$4 sm:$0xff]   ;;  %v2771_v2 = vld [vmem:[#allocation5 + $0x194] ss:$8 sps:$4 sm:$0xff]  }
  0xf1   :  { %v3399_v26 = vpop.eup %3075  ;;  %1946 = vmatpush1.bf16.msra.mxu1 %v2733_v12  ;;  %v259_v27 = vpack.c.bf16 %v3397_v25, %v3393_v22  ;;  %v2774_v4 = vld [vmem:[#allocation5 + $0x594] ss:$8 sps:$4 sm:$0xff]   ;;  %v2769_v47 = vld [vmem:[#allocation5 + $0x190] ss:$8 sps:$4 sm:$0xff]   ;;  %v2777_v7 = vld [vmem:[#allocation5 + $0x1a4] ss:$8 sps:$4 sm:$0xff]  }
  0xf2   :  { %v3403_v20 = vpop.eup %3077  ;;  %2118 = vmatpush1.bf16.msra.mxu0 %v2736_v17  ;;  %1947 = vmatprep.subr.bf16.mxu1 %v2741_v40  ;;  %v2772_v63 = vld [vmem:[#allocation5 + $0x590] ss:$8 sps:$4 sm:$0xff]   ;;  %v2780_v8 = vld [vmem:[#allocation5 + $0x5a4] ss:$8 sps:$4 sm:$0xff]   ;;  %v2775_v5 = vld [vmem:[#allocation5 + $0x1a0] ss:$8 sps:$4 sm:$0xff]  }
  0xf3   :  { %v3405_v29 = vpop.eup %3079  ;;  %2119 = vmatprep.subr.bf16.mxu0 %v2744_v58  ;;  %v254_v32 = vpack.c.bf16 %v3403_v20, %v3399_v26  ;;  %v2778_v10 = vld [vmem:[#allocation5 + $0x5a0] ss:$8 sps:$4 sm:$0xff]   ;;  %v2783_v12 = vld [vmem:[#allocation5 + $0x1b4] ss:$8 sps:$4 sm:$0xff]   ;;  %v2781_v40 = vld [vmem:[#allocation5 + $0x1b0] ss:$8 sps:$4 sm:$0xff]  }
  0xf4   :  { %v3409_v33 = vpop.eup %3081  ;;  %v2786_v17 = vld [vmem:[#allocation5 + $0x5b4] ss:$8 sps:$4 sm:$0xff]   ;;  %v2784_v58 = vld [vmem:[#allocation5 + $0x5b0] ss:$8 sps:$4 sm:$0xff]   ;;  %v2789_v16 = vld [vmem:[#allocation5 + $0x1c4] ss:$8 sps:$4 sm:$0xff]  }
  0xf5   :  { %v3411_v34 = vpop.eup %3083  ;;  %1948 = vmatpush1.bf16.msra.mxu1 %v2739_v39  ;;  %v262_v36 = vpack.c.bf16 %v3409_v33, %v3405_v29  ;;  %v2792_v39 = vld [vmem:[#allocation5 + $0x5c4] ss:$8 sps:$4 sm:$0xff]   ;;  %v2823_v24 = vld [vmem:[#allocation5 + $0x220] ss:$8 sps:$4 sm:$0xff]   ;;  %v2834_v57 = vld [vmem:[#allocation5 + $0x634] ss:$8 sps:$4 sm:$0xff]  }
  0xf6   :  { %v3415_v37 = vpop.eup %3085  ;;  %2120 = vmatpush1.bf16.msra.mxu0 %v2742_v43  ;;  %1949 = vmatprep.subr.bf16.mxu1 %v2747_v28  ;;  %v2787_v43 = vld [vmem:[#allocation5 + $0x1c0] ss:$8 sps:$4 sm:$0xff]   ;;  %v2828_v19 = vld [vmem:[#allocation5 + $0x624] ss:$8 sps:$4 sm:$0xff]   ;;  %v2829_v61 = vld [vmem:[#allocation5 + $0x230] ss:$8 sps:$4 sm:$0xff]  }
  0xf7   :  { %v3417_v41 = vpop.eup %3087  ;;  %2121 = vmatprep.subr.bf16.mxu0 %v2750_v30  ;;  %v253_v46 = vpack.c.bf16 %v3415_v37, %v3411_v34  ;;  %v2790_v28 = vld [vmem:[#allocation5 + $0x5c0] ss:$8 sps:$4 sm:$0xff]   ;;  %v2795_v30 = vld [vmem:[#allocation5 + $0x1d4] ss:$8 sps:$4 sm:$0xff]   ;;  %v2837_v45 = vld [vmem:[#allocation5 + $0x244] ss:$8 sps:$4 sm:$0xff]  }
  0xf8   :  { %v3421_v49 = vpop.eup %3089  ;;  %v2826_v53 = vld [vmem:[#allocation5 + $0x620] ss:$8 sps:$4 sm:$0xff]   ;;  %v2840_v6 = vld [vmem:[#allocation5 + $0x644] ss:$8 sps:$4 sm:$0xff]   ;;  %v2930_v25 = vld [vmem:[#allocation5 + $0x734] ss:$8 sps:$4 sm:$0xff]  }
  0xf9   :  { %1950 = vmatpush1.bf16.msra.mxu1 %v2745_v35  ;;  %v261_v51 = vpack.c.bf16 %v3421_v49, %v3417_v41  ;;  %v3425_v52 = vpop.eup %3091  ;;  %v2798_v35 = vld [vmem:[#allocation5 + $0x5d4] ss:$8 sps:$4 sm:$0xff]   ;;  %v2838_v9 = vld [vmem:[#allocation5 + $0x640] ss:$8 sps:$4 sm:$0xff]   ;;  %v2924_v31 = vld [vmem:[#allocation5 + $0x724] ss:$8 sps:$4 sm:$0xff]  }
  0xfa   :  { %2122 = vmatpush1.bf16.msra.mxu0 %v2748_v38  ;;  %1951 = vmatprep.subr.bf16.mxu1 %v2753_v42  ;;  %v3427_v55 = vpop.eup %3093  ;;  %v2793_v38 = vld [vmem:[#allocation5 + $0x1d0] ss:$8 sps:$4 sm:$0xff]   ;;  %v2919_v18 = vld [vmem:[#allocation5 + $0x320] ss:$8 sps:$4 sm:$0xff]   ;;  %v2933_v20 = vld [vmem:[#allocation5 + $0x344] ss:$8 sps:$4 sm:$0xff]  }
  0xfb   :  { %2123 = vmatprep.subr.bf16.mxu0 %v2756_v44  ;;  %v263_v56 = vpack.c.bf16 %v3427_v55, %v3425_v52  ;;  %v2796_v42 = vld [vmem:[#allocation5 + $0x5d0] ss:$8 sps:$4 sm:$0xff]   ;;  %v2801_v44 = vld [vmem:[#allocation5 + $0x1e4] ss:$8 sps:$4 sm:$0xff]   ;;  %v2922_v22 = vld [vmem:[#allocation5 + $0x720] ss:$8 sps:$4 sm:$0xff]  }
  0xfc   :  { %v2925_v26 = vld [vmem:[#allocation5 + $0x330] ss:$8 sps:$4 sm:$0xff]   ;;  %v2936_v29 = vld [vmem:[#allocation5 + $0x744] ss:$8 sps:$4 sm:$0xff]   ;;  %v2934_v33 = vld [vmem:[#allocation5 + $0x740] ss:$8 sps:$4 sm:$0xff]  }
  0xfd   :  { %1952 = vmatpush1.bf16.msra.mxu1 %v2751_v50  ;;  %v2804_v50 = vld [vmem:[#allocation5 + $0x5e4] ss:$8 sps:$4 sm:$0xff]   ;;  %v3015_v34 = vld [vmem:[#allocation5 + $0x840] ss:$8 sps:$4 sm:$0xff]   ;;  %v3020_v37 = vld [vmem:[#allocation5 + $0x854] ss:$8 sps:$4 sm:$0xff]  }
  0xfe   :  { %2124 = vmatpush1.bf16.msra.mxu0 %v2754_v48  ;;  %1953 = vmatprep.subr.bf16.mxu1 %v2759_v1  ;;  %v2799_v48 = vld [vmem:[#allocation5 + $0x1e0] ss:$8 sps:$4 sm:$0xff]   ;;  %v3018_v41 = vld [vmem:[#allocation5 + $0x850] ss:$8 sps:$4 sm:$0xff]  }
  0xff   :  { %2125 = vmatprep.subr.bf16.mxu0 %v2762_v13  ;;  %v2802_v1 = vld [vmem:[#allocation5 + $0x5e0] ss:$8 sps:$4 sm:$0xff]   ;;  %v2807_v13 = vld [vmem:[#allocation5 + $0x1f4] ss:$8 sps:$4 sm:$0xff]  }
 0x100   :  { %v3021_v49 = vld [vmem:[#allocation5 + $0x860] ss:$8 sps:$4 sm:$0xff]  }
 0x101   :  { %1954 = vmatpush1.bf16.msra.mxu1 %v2757_v0  ;;  %v2810_v0 = vld [vmem:[#allocation5 + $0x5f4] ss:$8 sps:$4 sm:$0xff]  }
 0x102   :  { %2126 = vmatpush1.bf16.msra.mxu0 %v2760_v59  ;;  %1955 = vmatprep.subr.bf16.mxu1 %v2765_v60  ;;  %v2805_v59 = vld [vmem:[#allocation5 + $0x1f0] ss:$8 sps:$4 sm:$0xff]  }
 0x103   :  { %2127 = vmatprep.subr.bf16.mxu0 %v2768_v11  ;;  %v2808_v60 = vld [vmem:[#allocation5 + $0x5f0] ss:$8 sps:$4 sm:$0xff]   ;;  %v2813_v11 = vld [vmem:[#allocation5 + $0x204] ss:$8 sps:$4 sm:$0xff]  }
 0x105   :  { %1956 = vmatpush1.bf16.msra.mxu1 %v2763_v62  ;;  %v2816_v62 = vld [vmem:[#allocation5 + $0x604] ss:$8 sps:$4 sm:$0xff]  }
 0x106   :  { %2128 = vmatpush1.bf16.msra.mxu0 %v2766_v21  ;;  %1957 = vmatprep.subr.bf16.mxu1 %v2771_v2  ;;  %v2811_v21 = vld [vmem:[#allocation5 + $0x200] ss:$8 sps:$4 sm:$0xff]  }
 0x107   :  { %2129 = vmatprep.subr.bf16.mxu0 %v2774_v4  ;;  %v2814_v2 = vld [vmem:[#allocation5 + $0x600] ss:$8 sps:$4 sm:$0xff]   ;;  %v2819_v4 = vld [vmem:[#allocation5 + $0x214] ss:$8 sps:$4 sm:$0xff]  }
 0x109   :  { %1958 = vmatpush1.bf16.msra.mxu1 %v2769_v47  ;;  %v2822_v47 = vld [vmem:[#allocation5 + $0x614] ss:$8 sps:$4 sm:$0xff]  }
 0x10a   :  { %2130 = vmatpush1.bf16.msra.mxu0 %v2772_v63  ;;  %1959 = vmatprep.subr.bf16.mxu1 %v2777_v7  ;;  %v2817_v63 = vld [vmem:[#allocation5 + $0x210] ss:$8 sps:$4 sm:$0xff]  }
 0x10b   :  { %2131 = vmatprep.subr.bf16.mxu0 %v2780_v8  ;;  %v2820_v7 = vld [vmem:[#allocation5 + $0x610] ss:$8 sps:$4 sm:$0xff]   ;;  %v2825_v8 = vld [vmem:[#allocation5 + $0x224] ss:$8 sps:$4 sm:$0xff]  }
 0x10d   :  { %1960 = vmatpush1.bf16.msra.mxu1 %v2775_v5  ;;  %v2846_v5 = vld [vmem:[#allocation5 + $0x654] ss:$8 sps:$4 sm:$0xff]  }
 0x10e   :  { %2132 = vmatpush1.bf16.msra.mxu0 %v2778_v10  ;;  %1961 = vmatprep.subr.bf16.mxu1 %v2783_v12  ;;  %v2841_v10 = vld [vmem:[#allocation5 + $0x250] ss:$8 sps:$4 sm:$0xff]  }
 0x10f   :  { %2133 = vmatprep.subr.bf16.mxu0 %v2786_v17  ;;  %v2844_v12 = vld [vmem:[#allocation5 + $0x650] ss:$8 sps:$4 sm:$0xff]   ;;  %v2849_v17 = vld [vmem:[#allocation5 + $0x264] ss:$8 sps:$4 sm:$0xff]  }
 0x111   :  { %1962 = vmatpush1.bf16.msra.mxu1 %v2781_v40  ;;  %v2852_v40 = vld [vmem:[#allocation5 + $0x664] ss:$8 sps:$4 sm:$0xff]  }
 0x112   :  { %2134 = vmatpush1.bf16.msra.mxu0 %v2784_v58  ;;  %1963 = vmatprep.subr.bf16.mxu1 %v2789_v16  ;;  %v2847_v58 = vld [vmem:[#allocation5 + $0x260] ss:$8 sps:$4 sm:$0xff]  }
 0x113   :  { %2135 = vmatprep.subr.bf16.mxu0 %v2792_v39  ;;  %v2850_v16 = vld [vmem:[#allocation5 + $0x660] ss:$8 sps:$4 sm:$0xff]   ;;  %v2855_v39 = vld [vmem:[#allocation5 + $0x274] ss:$8 sps:$4 sm:$0xff]  }
 0x115   :  { %1964 = vmatpush1.bf16.msra.mxu1 %v2787_v43  ;;  %v2858_v43 = vld [vmem:[#allocation5 + $0x674] ss:$8 sps:$4 sm:$0xff]  }
 0x116   :  { %2136 = vmatpush1.bf16.msra.mxu0 %v2790_v28  ;;  %1965 = vmatprep.subr.bf16.mxu1 %v2795_v30  ;;  %v2853_v28 = vld [vmem:[#allocation5 + $0x270] ss:$8 sps:$4 sm:$0xff]  }
 0x117   :  { %2137 = vmatprep.subr.bf16.mxu0 %v2798_v35  ;;  %v2856_v30 = vld [vmem:[#allocation5 + $0x670] ss:$8 sps:$4 sm:$0xff]   ;;  %v2861_v35 = vld [vmem:[#allocation5 + $0x284] ss:$8 sps:$4 sm:$0xff]  }
 0x119   :  { %1966 = vmatpush1.bf16.msra.mxu1 %v2793_v38  ;;  %v2864_v38 = vld [vmem:[#allocation5 + $0x684] ss:$8 sps:$4 sm:$0xff]  }
 0x11a   :  { %2138 = vmatpush1.bf16.msra.mxu0 %v2796_v42  ;;  %1967 = vmatprep.subr.bf16.mxu1 %v2801_v44  ;;  %v2859_v42 = vld [vmem:[#allocation5 + $0x280] ss:$8 sps:$4 sm:$0xff]  }
 0x11b   :  { %2139 = vmatprep.subr.bf16.mxu0 %v2804_v50  ;;  %v2862_v44 = vld [vmem:[#allocation5 + $0x680] ss:$8 sps:$4 sm:$0xff]   ;;  %v2867_v50 = vld [vmem:[#allocation5 + $0x294] ss:$8 sps:$4 sm:$0xff]  }
 0x11d   :  { %1968 = vmatpush1.bf16.msra.mxu1 %v2799_v48  ;;  %v2870_v48 = vld [vmem:[#allocation5 + $0x694] ss:$8 sps:$4 sm:$0xff]  }
 0x11e   :  { %2140 = vmatpush1.bf16.msra.mxu0 %v2802_v1  ;;  %1969 = vmatprep.subr.bf16.mxu1 %v2807_v13  ;;  %v2865_v1 = vld [vmem:[#allocation5 + $0x290] ss:$8 sps:$4 sm:$0xff]  }
 0x11f   :  { %2141 = vmatprep.subr.bf16.mxu0 %v2810_v0  ;;  %v2868_v13 = vld [vmem:[#allocation5 + $0x690] ss:$8 sps:$4 sm:$0xff]   ;;  %v2873_v0 = vld [vmem:[#allocation5 + $0x2a4] ss:$8 sps:$4 sm:$0xff]  }
 0x121   :  { %1970 = vmatpush1.bf16.msra.mxu1 %v2805_v59  ;;  %v2876_v59 = vld [vmem:[#allocation5 + $0x6a4] ss:$8 sps:$4 sm:$0xff]  }
 0x122   :  { %2142 = vmatpush1.bf16.msra.mxu0 %v2808_v60  ;;  %1982 = vmatprep.subr.bf16.mxu1 %v2813_v11  ;;  %v2871_v60 = vld [vmem:[#allocation5 + $0x2a0] ss:$8 sps:$4 sm:$0xff]  }
 0x123   :  { %2154 = vmatprep.subr.bf16.mxu0 %v2816_v62  ;;  %v2874_v11 = vld [vmem:[#allocation5 + $0x6a0] ss:$8 sps:$4 sm:$0xff]   ;;  %v2879_v62 = vld [vmem:[#allocation5 + $0x2b4] ss:$8 sps:$4 sm:$0xff]  }
 0x124   :  { %1972 = vmatmul.mubr.bf16.vlgmr.msra.gmra.mrb[0].mxu1 %v249_v54  ;;  %v2831_v54 = vld [vmem:[#allocation5 + $0x234] ss:$8 sps:$4 sm:$0xff]  }
 0x125   :  { %2144 = vmatmul.mubr.bf16.vlgmr.msra.gmra.mrb[0].mxu0 %v257_v3  ;;  %1983 = vmatpush1.bf16.msra.mxu1 %v2811_v21  ;;  %v2832_v3 = vld [vmem:[#allocation5 + $0x630] ss:$8 sps:$4 sm:$0xff]   ;;  %v2882_v21 = vld [vmem:[#allocation5 + $0x6b4] ss:$8 sps:$4 sm:$0xff]  }
 0x126   :  { %2014 = vmatprep.mubr.bf16.mxu1 %v252_v14  ;;  %2155 = vmatpush1.bf16.msra.mxu0 %v2814_v2  ;;  %v2835_v14 = vld [vmem:[#allocation5 + $0x240] ss:$8 sps:$4 sm:$0xff]   ;;  %v2877_v2 = vld [vmem:[#allocation5 + $0x2b0] ss:$8 sps:$4 sm:$0xff]  }
 0x127   :  { %2186 = vmatprep.mubr.bf16.mxu0 %v260_v15  ;;  %1984 = vmatprep.subr.bf16.mxu1 %v2819_v4  ;;  %v2843_v15 = vld [vmem:[#allocation5 + $0x254] ss:$8 sps:$4 sm:$0xff]   ;;  %v2880_v4 = vld [vmem:[#allocation5 + $0x6b0] ss:$8 sps:$4 sm:$0xff]  }
 0x128   :  { %2156 = vmatprep.subr.bf16.mxu0 %v2822_v47  ;;  %v2885_v47 = vld [vmem:[#allocation5 + $0x2c4] ss:$8 sps:$4 sm:$0xff]  }
 0x129   :  { %1985 = vmatpush1.bf16.msra.mxu1 %v2817_v63  ;;  %v2888_v63 = vld [vmem:[#allocation5 + $0x6c4] ss:$8 sps:$4 sm:$0xff]  }
 0x12a   :  { %2157 = vmatpush1.bf16.msra.mxu0 %v2820_v7  ;;  %1986 = vmatprep.subr.bf16.mxu1 %v2825_v8  ;;  %v2883_v7 = vld [vmem:[#allocation5 + $0x2c0] ss:$8 sps:$4 sm:$0xff]  }
 0x12b   :  { %2158 = vmatprep.subr.bf16.mxu0 %v2828_v19  ;;  %v2886_v8 = vld [vmem:[#allocation5 + $0x6c0] ss:$8 sps:$4 sm:$0xff]   ;;  %v2891_v19 = vld [vmem:[#allocation5 + $0x2d4] ss:$8 sps:$4 sm:$0xff]  }
 0x12d   :  { %1987 = vmatpush1.bf16.msra.mxu1 %v2823_v24  ;;  %v2894_v24 = vld [vmem:[#allocation5 + $0x6d4] ss:$8 sps:$4 sm:$0xff]  }
 0x12e   :  { %2159 = vmatpush1.bf16.msra.mxu0 %v2826_v53  ;;  %1988 = vmatprep.subr.bf16.mxu1 %v2831_v54  ;;  %v2889_v53 = vld [vmem:[#allocation5 + $0x2d0] ss:$8 sps:$4 sm:$0xff]  }
 0x12f   :  { %2160 = vmatprep.subr.bf16.mxu0 %v2834_v57  ;;  %v2892_v54 = vld [vmem:[#allocation5 + $0x6d0] ss:$8 sps:$4 sm:$0xff]   ;;  %v2897_v57 = vld [vmem:[#allocation5 + $0x2e4] ss:$8 sps:$4 sm:$0xff]  }
 0x131   :  { %1989 = vmatpush1.bf16.msra.mxu1 %v2829_v61  ;;  %v2900_v61 = vld [vmem:[#allocation5 + $0x6e4] ss:$8 sps:$4 sm:$0xff]  }
 0x132   :  { %2161 = vmatpush1.bf16.msra.mxu0 %v2832_v3  ;;  %1990 = vmatprep.subr.bf16.mxu1 %v2837_v45  ;;  %v2895_v3 = vld [vmem:[#allocation5 + $0x2e0] ss:$8 sps:$4 sm:$0xff]  }
 0x133   :  { %2162 = vmatprep.subr.bf16.mxu0 %v2840_v6  ;;  %v2898_v45 = vld [vmem:[#allocation5 + $0x6e0] ss:$8 sps:$4 sm:$0xff]   ;;  %v2903_v6 = vld [vmem:[#allocation5 + $0x2f4] ss:$8 sps:$4 sm:$0xff]  }
 0x135   :  { %1991 = vmatpush1.bf16.msra.mxu1 %v2835_v14  ;;  %v2906_v14 = vld [vmem:[#allocation5 + $0x6f4] ss:$8 sps:$4 sm:$0xff]  }
 0x136   :  { %2163 = vmatpush1.bf16.msra.mxu0 %v2838_v9  ;;  %1992 = vmatprep.subr.bf16.mxu1 %v2843_v15  ;;  %v2901_v9 = vld [vmem:[#allocation5 + $0x2f0] ss:$8 sps:$4 sm:$0xff]  }
 0x137   :  { %2164 = vmatprep.subr.bf16.mxu0 %v2846_v5  ;;  %v2904_v15 = vld [vmem:[#allocation5 + $0x6f0] ss:$8 sps:$4 sm:$0xff]   ;;  %v2909_v5 = vld [vmem:[#allocation5 + $0x304] ss:$8 sps:$4 sm:$0xff]  }
 0x139   :  { %1993 = vmatpush1.bf16.msra.mxu1 %v2841_v10  ;;  %v2912_v10 = vld [vmem:[#allocation5 + $0x704] ss:$8 sps:$4 sm:$0xff]  }
 0x13a   :  { %2165 = vmatpush1.bf16.msra.mxu0 %v2844_v12  ;;  %1994 = vmatprep.subr.bf16.mxu1 %v2849_v17  ;;  %v2907_v12 = vld [vmem:[#allocation5 + $0x300] ss:$8 sps:$4 sm:$0xff]  }
 0x13b   :  { %2166 = vmatprep.subr.bf16.mxu0 %v2852_v40  ;;  %v2910_v17 = vld [vmem:[#allocation5 + $0x700] ss:$8 sps:$4 sm:$0xff]   ;;  %v2915_v40 = vld [vmem:[#allocation5 + $0x314] ss:$8 sps:$4 sm:$0xff]  }
 0x13d   :  { %1995 = vmatpush1.bf16.msra.mxu1 %v2847_v58  ;;  %v2918_v58 = vld [vmem:[#allocation5 + $0x714] ss:$8 sps:$4 sm:$0xff]  }
 0x13e   :  { %2167 = vmatpush1.bf16.msra.mxu0 %v2850_v16  ;;  %1996 = vmatprep.subr.bf16.mxu1 %v2855_v39  ;;  %v2913_v16 = vld [vmem:[#allocation5 + $0x310] ss:$8 sps:$4 sm:$0xff]  }
 0x13f   :  { %2168 = vmatprep.subr.bf16.mxu0 %v2858_v43  ;;  %v2916_v39 = vld [vmem:[#allocation5 + $0x710] ss:$8 sps:$4 sm:$0xff]   ;;  %v2921_v43 = vld [vmem:[#allocation5 + $0x324] ss:$8 sps:$4 sm:$0xff]  }
 0x141   :  { %1997 = vmatpush1.bf16.msra.mxu1 %v2853_v28  ;;  %v2942_v28 = vld [vmem:[#allocation5 + $0x754] ss:$8 sps:$4 sm:$0xff]  }
 0x142   :  { %2169 = vmatpush1.bf16.msra.mxu0 %v2856_v30  ;;  %1998 = vmatprep.subr.bf16.mxu1 %v2861_v35  ;;  %v2937_v30 = vld [vmem:[#allocation5 + $0x350] ss:$8 sps:$4 sm:$0xff]  }
 0x143   :  { %2170 = vmatprep.subr.bf16.mxu0 %v2864_v38  ;;  %v2940_v35 = vld [vmem:[#allocation5 + $0x750] ss:$8 sps:$4 sm:$0xff]   ;;  %v2945_v38 = vld [vmem:[#allocation5 + $0x364] ss:$8 sps:$4 sm:$0xff]  }
 0x145   :  { %1999 = vmatpush1.bf16.msra.mxu1 %v2859_v42  ;;  %v2948_v42 = vld [vmem:[#allocation5 + $0x764] ss:$8 sps:$4 sm:$0xff]  }
 0x146   :  { %2171 = vmatpush1.bf16.msra.mxu0 %v2862_v44  ;;  %2000 = vmatprep.subr.bf16.mxu1 %v2867_v50  ;;  %v2943_v44 = vld [vmem:[#allocation5 + $0x360] ss:$8 sps:$4 sm:$0xff]  }
 0x147   :  { %2172 = vmatprep.subr.bf16.mxu0 %v2870_v48  ;;  %v2946_v50 = vld [vmem:[#allocation5 + $0x760] ss:$8 sps:$4 sm:$0xff]   ;;  %v2951_v48 = vld [vmem:[#allocation5 + $0x374] ss:$8 sps:$4 sm:$0xff]  }
 0x149   :  { %2001 = vmatpush1.bf16.msra.mxu1 %v2865_v1  ;;  %v2954_v1 = vld [vmem:[#allocation5 + $0x774] ss:$8 sps:$4 sm:$0xff]  }
 0x14a   :  { %2173 = vmatpush1.bf16.msra.mxu0 %v2868_v13  ;;  %2002 = vmatprep.subr.bf16.mxu1 %v2873_v0  ;;  %v2949_v13 = vld [vmem:[#allocation5 + $0x370] ss:$8 sps:$4 sm:$0xff]  }
 0x14b   :  { %2174 = vmatprep.subr.bf16.mxu0 %v2876_v59  ;;  %v2952_v0 = vld [vmem:[#allocation5 + $0x770] ss:$8 sps:$4 sm:$0xff]   ;;  %v2957_v59 = vld [vmem:[#allocation5 + $0x384] ss:$8 sps:$4 sm:$0xff]  }
 0x14d   :  { %2003 = vmatpush1.bf16.msra.mxu1 %v2871_v60  ;;  %v2960_v60 = vld [vmem:[#allocation5 + $0x784] ss:$8 sps:$4 sm:$0xff]  }
 0x14e   :  { %2175 = vmatpush1.bf16.msra.mxu0 %v2874_v11  ;;  %2004 = vmatprep.subr.bf16.mxu1 %v2879_v62  ;;  %v2955_v11 = vld [vmem:[#allocation5 + $0x380] ss:$8 sps:$4 sm:$0xff]  }
 0x14f   :  { %2176 = vmatprep.subr.bf16.mxu0 %v2882_v21  ;;  %v2958_v62 = vld [vmem:[#allocation5 + $0x780] ss:$8 sps:$4 sm:$0xff]   ;;  %v2963_v21 = vld [vmem:[#allocation5 + $0x394] ss:$8 sps:$4 sm:$0xff]  }
 0x151   :  { %2005 = vmatpush1.bf16.msra.mxu1 %v2877_v2  ;;  %v2966_v2 = vld [vmem:[#allocation5 + $0x794] ss:$8 sps:$4 sm:$0xff]  }
 0x152   :  { %2177 = vmatpush1.bf16.msra.mxu0 %v2880_v4  ;;  %2006 = vmatprep.subr.bf16.mxu1 %v2885_v47  ;;  %v2961_v4 = vld [vmem:[#allocation5 + $0x390] ss:$8 sps:$4 sm:$0xff]  }
 0x153   :  { %2178 = vmatprep.subr.bf16.mxu0 %v2888_v63  ;;  %v2964_v47 = vld [vmem:[#allocation5 + $0x790] ss:$8 sps:$4 sm:$0xff]   ;;  %v2969_v63 = vld [vmem:[#allocation5 + $0x3a4] ss:$8 sps:$4 sm:$0xff]  }
 0x155   :  { %2007 = vmatpush1.bf16.msra.mxu1 %v2883_v7  ;;  %v2972_v7 = vld [vmem:[#allocation5 + $0x7a4] ss:$8 sps:$4 sm:$0xff]  }
 0x156   :  { %2179 = vmatpush1.bf16.msra.mxu0 %v2886_v8  ;;  %2008 = vmatprep.subr.bf16.mxu1 %v2891_v19  ;;  %v2967_v8 = vld [vmem:[#allocation5 + $0x3a0] ss:$8 sps:$4 sm:$0xff]  }
 0x157   :  { %2180 = vmatprep.subr.bf16.mxu0 %v2894_v24  ;;  %v2970_v19 = vld [vmem:[#allocation5 + $0x7a0] ss:$8 sps:$4 sm:$0xff]   ;;  %v2975_v24 = vld [vmem:[#allocation5 + $0x3b4] ss:$8 sps:$4 sm:$0xff]  }
 0x159   :  { %2009 = vmatpush1.bf16.msra.mxu1 %v2889_v53  ;;  %v2978_v53 = vld [vmem:[#allocation5 + $0x7b4] ss:$8 sps:$4 sm:$0xff]  }
 0x15a   :  { %2181 = vmatpush1.bf16.msra.mxu0 %v2892_v54  ;;  %2010 = vmatprep.subr.bf16.mxu1 %v2897_v57  ;;  %v2973_v54 = vld [vmem:[#allocation5 + $0x3b0] ss:$8 sps:$4 sm:$0xff]  }
 0x15b   :  { %2182 = vmatprep.subr.bf16.mxu0 %v2900_v61  ;;  %v2976_v57 = vld [vmem:[#allocation5 + $0x7b0] ss:$8 sps:$4 sm:$0xff]   ;;  %v2981_v61 = vld [vmem:[#allocation5 + $0x3c4] ss:$8 sps:$4 sm:$0xff]  }
 0x15d   :  { %2011 = vmatpush1.bf16.msra.mxu1 %v2895_v3  ;;  %v2984_v3 = vld [vmem:[#allocation5 + $0x7c4] ss:$8 sps:$4 sm:$0xff]  }
 0x15e   :  { %2183 = vmatpush1.bf16.msra.mxu0 %v2898_v45  ;;  %2012 = vmatprep.subr.bf16.mxu1 %v2903_v6  ;;  %v2979_v45 = vld [vmem:[#allocation5 + $0x3c0] ss:$8 sps:$4 sm:$0xff]  }
 0x15f   :  { %2184 = vmatprep.subr.bf16.mxu0 %v2906_v14  ;;  %v2982_v6 = vld [vmem:[#allocation5 + $0x7c0] ss:$8 sps:$4 sm:$0xff]   ;;  %v2987_v14 = vld [vmem:[#allocation5 + $0x3d4] ss:$8 sps:$4 sm:$0xff]  }
 0x161   :  { %2013 = vmatpush1.bf16.msra.mxu1 %v2901_v9  ;;  %v2990_v9 = vld [vmem:[#allocation5 + $0x7d4] ss:$8 sps:$4 sm:$0xff]  }
 0x162   :  { %2185 = vmatpush1.bf16.msra.mxu0 %v2904_v15  ;;  %2025 = vmatprep.subr.bf16.mxu1 %v2909_v5  ;;  %v2985_v15 = vld [vmem:[#allocation5 + $0x3d0] ss:$8 sps:$4 sm:$0xff]  }
 0x163   :  { %2197 = vmatprep.subr.bf16.mxu0 %v2912_v10  ;;  %v2988_v5 = vld [vmem:[#allocation5 + $0x7d0] ss:$8 sps:$4 sm:$0xff]   ;;  %v2993_v10 = vld [vmem:[#allocation5 + $0x3e4] ss:$8 sps:$4 sm:$0xff]  }
 0x164   :  { %2015 = vmatmul.mubr.bf16.vlgmr.msra.gmra.mrb[0].mxu1 %v251_v23  ;;  %v2927_v23 = vld [vmem:[#allocation5 + $0x334] ss:$8 sps:$4 sm:$0xff]  }
 0x165   :  { %2187 = vmatmul.mubr.bf16.vlgmr.msra.gmra.mrb[0].mxu0 %v259_v27  ;;  %2026 = vmatpush1.bf16.msra.mxu1 %v2907_v12  ;;  %v2928_v27 = vld [vmem:[#allocation5 + $0x730] ss:$8 sps:$4 sm:$0xff]   ;;  %v2996_v12 = vld [vmem:[#allocation5 + $0x7e4] ss:$8 sps:$4 sm:$0xff]  }
 0x166   :  { %2057 = vmatprep.mubr.bf16.mxu1 %v254_v32  ;;  %2198 = vmatpush1.bf16.msra.mxu0 %v2910_v17  ;;  %v2931_v32 = vld [vmem:[#allocation5 + $0x340] ss:$8 sps:$4 sm:$0xff]  }
 0x167   :  { %2229 = vmatprep.mubr.bf16.mxu0 %v262_v36  ;;  %2027 = vmatprep.subr.bf16.mxu1 %v2915_v40  ;;  %v2939_v36 = vld [vmem:[#allocation5 + $0x354] ss:$8 sps:$4 sm:$0xff]   ;;  %v2991_v17 = vld [vmem:[#allocation5 + $0x3e0] ss:$8 sps:$4 sm:$0xff]  }
 0x168   :  { %2199 = vmatprep.subr.bf16.mxu0 %v2918_v58  ;;  %v2994_v40 = vld [vmem:[#allocation5 + $0x7e0] ss:$8 sps:$4 sm:$0xff]   ;;  %v2999_v58 = vld [vmem:[#allocation5 + $0x3f4] ss:$8 sps:$4 sm:$0xff]  }
 0x169   :  { %2028 = vmatpush1.bf16.msra.mxu1 %v2913_v16  ;;  %v3002_v16 = vld [vmem:[#allocation5 + $0x7f4] ss:$8 sps:$4 sm:$0xff]  }
 0x16a   :  { %2200 = vmatpush1.bf16.msra.mxu0 %v2916_v39  ;;  %2029 = vmatprep.subr.bf16.mxu1 %v2921_v43  ;;  %v2997_v39 = vld [vmem:[#allocation5 + $0x3f0] ss:$8 sps:$4 sm:$0xff]  }
 0x16b   :  { %2201 = vmatprep.subr.bf16.mxu0 %v2924_v31  ;;  %v3000_v43 = vld [vmem:[#allocation5 + $0x7f0] ss:$8 sps:$4 sm:$0xff]   ;;  %v3005_v31 = vld [vmem:[#allocation5 + $0x804] ss:$8 sps:$4 sm:$0xff]  }
 0x16d   :  { %2030 = vmatpush1.bf16.msra.mxu1 %v2919_v18  ;;  %v3003_v18 = vld [vmem:[#allocation5 + $0x800] ss:$8 sps:$4 sm:$0xff]  }
 0x16e   :  { %2202 = vmatpush1.bf16.msra.mxu0 %v2922_v22  ;;  %2031 = vmatprep.subr.bf16.mxu1 %v2927_v23  ;;  %v3008_v22 = vld [vmem:[#allocation5 + $0x814] ss:$8 sps:$4 sm:$0xff]   ;;  %v3006_v23 = vld [vmem:[#allocation5 + $0x810] ss:$8 sps:$4 sm:$0xff]  }
 0x16f   :  { %2203 = vmatprep.subr.bf16.mxu0 %v2930_v25  ;;  %v3189_v25 = vmov 0  }
 0x171   :  { %2032 = vmatpush1.bf16.msra.mxu1 %v2925_v26  ;;  %v3011_v26 = vld [vmem:[#allocation5 + $0x824] ss:$8 sps:$4 sm:$0xff]  }
 0x172   :  { %2204 = vmatpush1.bf16.msra.mxu0 %v2928_v27  ;;  %2033 = vmatprep.subr.bf16.mxu1 %v2933_v20  ;;  %v3009_v27 = vld [vmem:[#allocation5 + $0x820] ss:$8 sps:$4 sm:$0xff]   ;;  %v3014_v20 = vld [vmem:[#allocation5 + $0x834] ss:$8 sps:$4 sm:$0xff]  }
 0x173   :  { %2205 = vmatprep.subr.bf16.mxu0 %v2936_v29  ;;  %v3012_v29 = vld [vmem:[#allocation5 + $0x830] ss:$8 sps:$4 sm:$0xff]  }
 0x175   :  { %2034 = vmatpush1.bf16.msra.mxu1 %v2931_v32  ;;  %v3017_v32 = vld [vmem:[#allocation5 + $0x844] ss:$8 sps:$4 sm:$0xff]  }
 0x176   :  { %2206 = vmatpush1.bf16.msra.mxu0 %v2934_v33  ;;  %2035 = vmatprep.subr.bf16.mxu1 %v2939_v36  ;;  %v3024_v33 = vld [vmem:[#allocation5 + $0x870] ss:$8 sps:$4 sm:$0xff]  }
 0x177   :  { %2207 = vmatprep.subr.bf16.mxu0 %v2942_v28 }
 0x179   :  { %2036 = vmatpush1.bf16.msra.mxu1 %v2937_v30 }
 0x17a   :  { %2208 = vmatpush1.bf16.msra.mxu0 %v2940_v35  ;;  %2037 = vmatprep.subr.bf16.mxu1 %v2945_v38 }
 0x17b   :  { %2209 = vmatprep.subr.bf16.mxu0 %v2948_v42 }
 0x17d   :  { %2038 = vmatpush1.bf16.msra.mxu1 %v2943_v44 }
 0x17e   :  { %2210 = vmatpush1.bf16.msra.mxu0 %v2946_v50  ;;  %2039 = vmatprep.subr.bf16.mxu1 %v2951_v48 }
 0x17f   :  { %2211 = vmatprep.subr.bf16.mxu0 %v2954_v1 }
 0x181   :  { %2040 = vmatpush1.bf16.msra.mxu1 %v2949_v13 }
 0x182   :  { %2212 = vmatpush1.bf16.msra.mxu0 %v2952_v0  ;;  %2041 = vmatprep.subr.bf16.mxu1 %v2957_v59 }
 0x183   :  { %2213 = vmatprep.subr.bf16.mxu0 %v2960_v60 }
 0x185   :  { %2042 = vmatpush1.bf16.msra.mxu1 %v2955_v11 }
 0x186   :  { %2214 = vmatpush1.bf16.msra.mxu0 %v2958_v62  ;;  %2043 = vmatprep.subr.bf16.mxu1 %v2963_v21 }
 0x187   :  { %2215 = vmatprep.subr.bf16.mxu0 %v2966_v2 }
 0x189   :  { %2044 = vmatpush1.bf16.msra.mxu1 %v2961_v4 }
 0x18a   :  { %2216 = vmatpush1.bf16.msra.mxu0 %v2964_v47  ;;  %2045 = vmatprep.subr.bf16.mxu1 %v2969_v63 }
 0x18b   :  { %2217 = vmatprep.subr.bf16.mxu0 %v2972_v7 }
 0x18d   :  { %2046 = vmatpush1.bf16.msra.mxu1 %v2967_v8 }
 0x18e   :  { %2218 = vmatpush1.bf16.msra.mxu0 %v2970_v19  ;;  %2047 = vmatprep.subr.bf16.mxu1 %v2975_v24 }
 0x18f   :  { %2219 = vmatprep.subr.bf16.mxu0 %v2978_v53 }
 0x191   :  { %2048 = vmatpush1.bf16.msra.mxu1 %v2973_v54 }
 0x192   :  { %2220 = vmatpush1.bf16.msra.mxu0 %v2976_v57  ;;  %2049 = vmatprep.subr.bf16.mxu1 %v2981_v61 }
 0x193   :  { %2221 = vmatprep.subr.bf16.mxu0 %v2984_v3 }
 0x195   :  { %2050 = vmatpush1.bf16.msra.mxu1 %v2979_v45 }
 0x196   :  { %2222 = vmatpush1.bf16.msra.mxu0 %v2982_v6  ;;  %2051 = vmatprep.subr.bf16.mxu1 %v2987_v14 }
 0x197   :  { %2223 = vmatprep.subr.bf16.mxu0 %v2990_v9 }
 0x199   :  { %2052 = vmatpush1.bf16.msra.mxu1 %v2985_v15 }
 0x19a   :  { %2224 = vmatpush1.bf16.msra.mxu0 %v2988_v5  ;;  %2053 = vmatprep.subr.bf16.mxu1 %v2993_v10 }
 0x19b   :  { %2225 = vmatprep.subr.bf16.mxu0 %v2996_v12 }
 0x19d   :  { %2054 = vmatpush1.bf16.msra.mxu1 %v2991_v17 }
 0x19e   :  { %2226 = vmatpush1.bf16.msra.mxu0 %v2994_v40  ;;  %2055 = vmatprep.subr.bf16.mxu1 %v2999_v58 }
 0x19f   :  { %2227 = vmatprep.subr.bf16.mxu0 %v3002_v16 }
 0x1a1   :  { %2056 = vmatpush1.bf16.msra.mxu1 %v2997_v39 }
 0x1a2   :  { %2228 = vmatpush1.bf16.msra.mxu0 %v3000_v43 }
 0x1a3   :  { %2240 = vmatprep.subr.bf16.mxu0 %v3005_v31 }
 0x1a4   :  { %2058 = vmatmul.mubr.bf16.vlgmr.msra.gmra.mrb[0].mxu1 %v253_v46  ;;  %v3023_v46 = vld [vmem:[#allocation5 + $0x864] ss:$8 sps:$4 sm:$0xff]  }
 0x1a5   :  { %2230 = vmatmul.mubr.bf16.vlgmr.msra.gmra.mrb[0].mxu0 %v261_v51  ;;  %v3026_v51 = vld [vmem:[#allocation5 + $0x874] ss:$8 sps:$4 sm:$0xff]  }
 0x1a6   :  { %2241 = vmatpush1.bf16.msra.mxu0 %v3003_v18  ;;  %2272 = vmatprep.mubr.bf16.mxu0 %v3189_v25 }
 0x1a7   :  { %2242 = vmatprep.subr.bf16.mxu0 %v3008_v22 }
 0x1aa   :  { %2243 = vmatpush1.bf16.msra.mxu0 %v3006_v23 }
 0x1ab   :  { %2244 = vmatprep.subr.bf16.mxu0 %v3011_v26 }
 0x1ae   :  { %2245 = vmatpush1.bf16.msra.mxu0 %v3009_v27 }
 0x1af   :  { %2246 = vmatprep.subr.bf16.mxu0 %v3014_v20 }
 0x1b2   :  { %2247 = vmatpush1.bf16.msra.mxu0 %v3012_v29 }
 0x1b3   :  { %2248 = vmatprep.subr.bf16.mxu0 %v3017_v32 }
 0x1b6   :  { %2249 = vmatpush1.bf16.msra.mxu0 %v3015_v34 }
 0x1b7   :  { %2250 = vmatprep.subr.bf16.mxu0 %v3020_v37 }
 0x1ba   :  { %2251 = vmatpush1.bf16.msra.mxu0 %v3018_v41 }
 0x1bb   :  { %2252 = vmatprep.subr.bf16.mxu0 %v3023_v46 }
 0x1be   :  { %2253 = vmatpush1.bf16.msra.mxu0 %v3021_v49 }
 0x1bf   :  { %2254 = vmatprep.subr.bf16.mxu0 %v3026_v51 }
 0x1c2   :  { %2255 = vmatpush1.bf16.msra.mxu0 %v3024_v33 }
 0x1c5   :  { %2273 = vmatmul.mubr.bf16.vlgmr.msra.gmra.mrb[0].mxu0 %v263_v56 }
 0x277   :  { %v2059_v36 = vpop.f32.mrb[0].mxu1 }
 0x278   :  { %v2061_v28 = vpop.f32.mrb[1].mxu1 }
 0x279   :  { %v2063_v30 = vpop.f32.mrb[2].mxu1 }
 0x27a   :  { %v2065_v35 = vpop.f32.mrb[3].mxu1 }
 0x298   :  { %v2274_v38 = vpop.f32.mrb[0].mxu0 }
 0x299   :  { %v2579_v42 = vadd.f32 %v2274_v38, %v2059_v36  ;;  %v2276_v44 = vpop.f32.mrb[1].mxu0 }
 0x29a   :  { %v2580_v50 = vadd.f32 %v2276_v44, %v2061_v28  ;;  %v2278_v48 = vpop.f32.mrb[2].mxu0 }
 0x29b   :  { %3095 = vrcp.f32 %v2579_v42  ;;  %v2581_v1 = vadd.f32 %v2278_v48, %v2063_v30  ;;  %v2280_v13 = vpop.f32.mrb[3].mxu0 }
 0x29c   :  { %v2582_v0 = vadd.f32 %v2280_v13, %v2065_v35 }
 0x29d   :  { %3097 = vrcp.f32 %v2581_v1 }
 0x2a5   :  { %v3096_v59 = vpop.eup %3095 }
 0x2a6   :  { %v2285_v60 = vmul.f32 %v3096_v59, %v2580_v50 }
 0x2a7   :  { %v3098_v52 = vpop.eup %3097 }
 0x2a8   :  { %2287 = vst [vmem:[#allocation7] sm:$0xff] %v2285_v60  ;;  %v2286_v55 = vmul.f32 %v3098_v52, %v2582_v0 }
 0x2aa   :  { %2288 = vst [vmem:[#allocation7 + $0x8] sm:$0xff] %v2286_v55 }
 0x2ab   :  { %3166 = shalt.err (!%p3163_p6)
}
 0x2ac   :  { %s3167_s12 = scalar_lea.hbm %s3481_s2, 256 }
 0x2ad   :  { %p3168_p7 = scmp.ne.s32.totalorder %s3481_s2, %s3167_s12  ;;  %p3171_p8 = scmp.lt.u32.totalorder %s3167_s12, %s3481_s2 }
 0x2af   :  { %p3173_p9 = pnand %p3171_p8, %p3168_p7 }
 0x2b1   :  { %3176 = shalt.err (!%p3173_p9)
}
 0x2b2   :  { %2300 = dma.vmem_to_hbm [thread:$0]  %s2295_s8, 256, %s3481_s2, [#allocation4], %s3187_s0, %s3187_s0, %s3188_s5  }
 0x2b3   :  { %3181 = dma.done.wait [#allocation4], 256  }
 0x2b4   :  { %3182 = vsyncadd [#allocation4], 4294967040 }
 0x2b5   :  { %2304 = vsyncpa [#allocation3], 1 }
 0x2b6   :  { %2305 = vsyncpa [#allocation6], 1 }
 0x2b7   :  { %2306 = vsyncpa [#allocation4], 1 }

</bundles_post_ra>
